<compile_context>
chip_gen: v6e
topology: v6e:2x2x1
jax: 0.10.0
libtpu: 0.0.40
codegen_flags: <defaults>
</compile_context>

<pallas_src>
import functools
import math

import jax
import jax.numpy as jnp
from jax.experimental import pallas as pl
from jax.experimental.pallas import tpu as pltpu


def _ntm_kernel(
    x_ref, h_ref, mem_ref, prev_r_ref, prev_w_ref,
    w_x_ref, w_h_ref, b_x_ref, b_h_ref, w_ihr_ref,
    w_ra_ref, b_ra_ref, w_w_ref, b_w_ref,
    ee_ref, ee_t_ref, ew_ref, ew_t_ref, shiftcat_ref,
    out_ref,
    *, M, S, N, ns):
    NM = N * M
    A = M + 1 + ns
    inv_sqrt_m = 1.0 / math.sqrt(M)

    x = x_ref[...]              # (B, I)
    h = h_ref[...]              # (B, S)
    mem = mem_ref[...]          # (B, N*M)   lane-dense flat memory
    ee = ee_ref[...]            # (M, N*M)   ee[m, n*M+m] = 1
    ew = ew_ref[...]            # (N, N*M)   ew[n, n*M+m] = 1

    def softmax(v):
        v = v - jnp.max(v, axis=-1, keepdims=True)
        e = jnp.exp(v)
        # exact reciprocal (approx=True breaches little margin vs the 1e-3 check)
        return e * pl.reciprocal(jnp.sum(e, axis=-1, keepdims=True), approx=False)

    def addressing(args, prev_addr):
        query = args[:, :M]                                   # (B, M)
        gate = jax.nn.sigmoid(args[:, M:M + 1])               # (B, 1)
        sdist = softmax(args[:, M + 1:M + 1 + ns])            # (B, ns)

        # content addressing: scores[b,n] = sum_m mem[b,n,m] * query[b,m]
        q_exp = jnp.dot(query, ee, preferred_element_type=jnp.float32)      # (B, N*M)
        scores = jnp.dot(mem * q_exp, ew_t_ref[...],
                         preferred_element_type=jnp.float32) * inv_sqrt_m   # (B, N)
        content = softmax(scores)

        interp = gate * content + (1.0 - gate) * prev_addr                  # (B, N)

        # circular shift: one matmul against the concatenated rotation matrix,
        # then weight the ns contiguous N-lane slices by the shift distribution.
        rot = jnp.dot(interp, shiftcat_ref[...],
                      preferred_element_type=jnp.float32)                   # (B, ns*N)
        shifted = sdist[:, 0:1] * rot[:, :N]
        for j in range(1, ns):
            shifted = shifted + sdist[:, j:j + 1] * rot[:, j * N:(j + 1) * N]
        return shifted

    # ---- fused x-side and h-side dots (each result exactly 128 lanes wide) ----
    xw = jnp.dot(x, w_x_ref[...], preferred_element_type=jnp.float32) + b_x_ref[...]
    hw = jnp.dot(h, w_h_ref[...], preferred_element_type=jnp.float32) + b_h_ref[...]
    feat = jnp.maximum(xw[:, :S] + hw[:, :S], 0.0)   # relu(Linear([x, h]))
    gi_x = xw[:, S:]                                 # x @ w_ih_x + b_ih
    gh = hw[:, S:]                                   # h @ w_hh   + b_hh

    # ---- read head ----
    ra_args = jnp.dot(feat, w_ra_ref[...], preferred_element_type=jnp.float32) + b_ra_ref[...]
    read_addr = addressing(ra_args, prev_r_ref[...])                        # (B, N)
    r_exp = jnp.dot(read_addr, ew, preferred_element_type=jnp.float32)      # (B, N*M)
    read_data = jnp.dot(mem * r_exp, ee_t_ref[...],
                        preferred_element_type=jnp.float32)                 # (B, M)

    # ---- GRU cell on concat[x, read_data] (x part already in gi_x) ----
    gi = gi_x + jnp.dot(read_data, w_ihr_ref[...], preferred_element_type=jnp.float32)
    r = jax.nn.sigmoid(gi[:, :S] + gh[:, :S])
    z = jax.nn.sigmoid(gi[:, S:2 * S] + gh[:, S:2 * S])
    n = jnp.tanh(gi[:, 2 * S:] + r * gh[:, 2 * S:])
    h_new = (1.0 - z) * n + z * h

    # ---- write head (single fused dot for addressing args + erase/add) ----
    hnw = jnp.dot(h_new, w_w_ref[...], preferred_element_type=jnp.float32) + b_w_ref[...]
    write_addr = addressing(hnw[:, :A], prev_w_ref[...])                    # (B, N)
    erase = jax.nn.sigmoid(hnw[:, A:A + M])                                 # (B, M)
    add = hnw[:, A + M:A + 2 * M]                                           # (B, M)

    w_exp = jnp.dot(write_addr, ew, preferred_element_type=jnp.float32)     # (B, N*M)
    e_exp = jnp.dot(erase, ee, preferred_element_type=jnp.float32)          # (B, N*M)
    a_exp = jnp.dot(add, ee, preferred_element_type=jnp.float32)            # (B, N*M)
    new_mem = (1.0 - w_exp * e_exp) * mem + w_exp * a_exp                   # (B, N*M)

    # ---- packed lane-dense output slab: [memory | state | read_addr | write_addr] ----
    out_ref[:, :NM] = new_mem                      # 128-lane-aligned, unmasked stores
    out_ref[:, NM:NM + S] = h_new
    out_ref[:, NM + S:NM + S + N] = read_addr
    out_ref[:, NM + S + N:NM + S + 2 * N] = write_addr


def ntm_pallas(x, h, mem, prev_r, prev_w, full, *, max_shift):
    """full = PyTorch params with weights stored (in_features, out_features)."""
    B, I = x.shape
    S = h.shape[1]
    _, N, M = mem.shape
    ns = 2 * max_shift + 1
    A = M + 1 + ns
    NM = N * M
    f32 = jnp.float32
    (w_rhf, b_rhf, w_ra, b_ra, w_ih, b_ih, w_hh, b_hh, w_wa, b_wa, w_ea, b_ea) = full

    # Fused weight/bias slabs (x-side, h-side, write-head).
    w_x = jnp.concatenate([w_rhf[:I], w_ih[:I]], axis=1)            # (I, 4S)
    b_x = jnp.concatenate([b_rhf, b_ih], axis=1)                    # (1, 4S)
    w_h = jnp.concatenate([w_rhf[I:], w_hh], axis=1)                # (S, 4S)
    b_h = jnp.concatenate([jnp.zeros((1, S), f32), b_hh], axis=1)   # (1, 4S)
    w_ihr = w_ih[I:]                                                # (M, 3S)
    w_w = jnp.concatenate([w_wa, w_ea], axis=1)                     # (S, A+2M)
    b_w = jnp.concatenate([b_wa, b_ea], axis=1)                     # (1, A+2M)

    # One-hot expansion / reduction constants for the flat (B, N*M) memory layout.
    ee = jnp.tile(jnp.eye(M, dtype=f32), (1, N))        # (M, N*M): ee[m, n*M+m] = 1
    ew = jnp.repeat(jnp.eye(N, dtype=f32), M, axis=1)   # (N, N*M): ew[n, n*M+m] = 1
    ee_t = ee.T                                         # (N*M, M)
    ew_t = ew.T                                         # (N*M, N)

    # Concatenated circular-shift selection: shiftcat[k, j*N+i] = 1 iff
    # k == (i + j - max_shift) % N, so (interp @ shiftcat)[:, j*N+i] = interp[:, (i+j-max_shift)%N].
    i_idx = jnp.arange(N)
    j_off = jnp.arange(ns) - max_shift
    target = (i_idx[None, :] + j_off[:, None]) % N                  # (ns, N)
    shiftcat = (jnp.arange(N)[:, None] == target.reshape(1, ns * N)).astype(f32)  # (N, ns*N)

    mem_flat = mem.reshape(B, NM)

    args = (x, h, mem_flat, prev_r, prev_w,
            w_x, w_h, b_x, b_h, w_ihr, w_ra, b_ra, w_w, b_w,
            ee, ee_t, ew, ew_t, shiftcat)
    vmem = pl.BlockSpec(memory_space=pltpu.MemorySpace.VMEM)

    out = pl.pallas_call(
        functools.partial(_ntm_kernel, M=M, S=S, N=N, ns=ns),
        out_shape=jax.ShapeDtypeStruct((B, NM + S + 2 * N), f32),
        in_specs=[vmem] * len(args),
        out_specs=vmem,
    )(*args)

    new_mem = out[:, :NM].reshape(B, N, M)
    state = out[:, NM:NM + S]
    raddr = out[:, NM + S:NM + S + N]
    waddr = out[:, NM + S + N:]
    return state, new_mem, raddr, waddr


def ntm_reference(x, h, mem, prev_r, prev_w, full, *, M, S, N, max_shift):
    """Pure-JAX reference matching the PyTorch module (uses un-split weights)."""
    ns = 2 * max_shift + 1
    (w_rhf, b_rhf, w_ra, b_ra, w_ih, b_ih, w_hh, b_hh, w_wa, b_wa, w_ea, b_ea) = full
    hp = jax.lax.Precision.HIGHEST

    def addressing(feat, w, b, prev):
        args = jnp.dot(feat, w, precision=hp) + b
        query = args[:, :M]
        gate = jax.nn.sigmoid(args[:, M:M + 1])
        sdist = jax.nn.softmax(args[:, M + 1:], axis=1)
        scores = jnp.einsum('bnm,bm->bn', mem, query, precision=hp) / math.sqrt(M)
        content = jax.nn.softmax(scores, axis=1)
        interp = gate * content + (1.0 - gate) * prev
        tbl = (jnp.arange(N)[:, None] + (jnp.arange(ns) - max_shift)[None, :]) % N
        return jnp.sum(sdist[:, None, :] * interp[:, tbl], axis=2)

    feat = jax.nn.relu(jnp.dot(jnp.concatenate([x, h], axis=1), w_rhf, precision=hp) + b_rhf)
    raddr = addressing(feat, w_ra, b_ra, prev_r)
    rdata = jnp.einsum('bn,bnm->bm', raddr, mem, precision=hp)
    xi = jnp.concatenate([x, rdata], axis=1)
    gi = jnp.dot(xi, w_ih, precision=hp) + b_ih
    gh = jnp.dot(h, w_hh, precision=hp) + b_hh
    r = jax.nn.sigmoid(gi[:, :S] + gh[:, :S])
    z = jax.nn.sigmoid(gi[:, S:2 * S] + gh[:, S:2 * S])
    n = jnp.tanh(gi[:, 2 * S:] + r * gh[:, 2 * S:])
    h_new = (1.0 - z) * n + z * h
    waddr = addressing(h_new, w_wa, b_wa, prev_w)
    ea = jnp.dot(h_new, w_ea, precision=hp) + b_ea
    erase = jax.nn.sigmoid(ea[:, :M])
    add = ea[:, M:]
    new_mem = ((1.0 - waddr[:, :, None] * erase[:, None, :]) * mem
               + waddr[:, :, None] * add[:, None, :])
    return h_new, new_mem, raddr, waddr


if __name__ == "__main__":
    # Shapes consistent with NTM(input_size=16, state_size=32,
    # memory_bank_size=32, max_shift=1), batch=8, 16 memory banks.
    B, I, S, N, M, max_shift = 8, 16, 32, 16, 32, 1
    ns = 2 * max_shift + 1
    A = M + 1 + ns

    key = jax.random.PRNGKey(0)
    keys = jax.random.split(key, 20)

    def uinit(k, shape, fan_in):
        bnd = 1.0 / math.sqrt(fan_in)
        return jax.random.uniform(k, shape, jnp.float32, -bnd, bnd)

    # Deterministic parameter init (PyTorch-style bounds), weights stored (in, out).
    w_rhf = uinit(keys[0], (I + S, S), I + S); b_rhf = uinit(keys[1], (1, S), I + S)
    w_ra  = uinit(keys[2], (S, A), S);         b_ra  = uinit(keys[3], (1, A), S)
    w_ih  = uinit(keys[4], (I + M, 3 * S), S); b_ih  = uinit(keys[5], (1, 3 * S), S)
    w_hh  = uinit(keys[6], (S, 3 * S), S);     b_hh  = uinit(keys[7], (1, 3 * S), S)
    w_wa  = uinit(keys[8], (S, A), S);         b_wa  = uinit(keys[9], (1, A), S)
    w_ea  = uinit(keys[10], (S, 2 * M), S);    b_ea  = uinit(keys[11], (1, 2 * M), S)

    x = jax.random.normal(keys[12], (B, I), jnp.float32)
    h = jax.random.normal(keys[13], (B, S), jnp.float32)
    mem = jax.random.normal(keys[14], (B, N, M), jnp.float32)
    prev_r = jax.nn.softmax(jax.random.normal(keys[15], (B, N), jnp.float32), axis=1)
    prev_w = jax.nn.softmax(jax.random.normal(keys[16], (B, N), jnp.float32), axis=1)

    full = (w_rhf, b_rhf, w_ra, b_ra, w_ih, b_ih, w_hh, b_hh, w_wa, b_wa, w_ea, b_ea)

    out = ntm_pallas(x, h, mem, prev_r, prev_w, full, max_shift=max_shift)
    out = jax.block_until_ready(out)

    ref = ntm_reference(x, h, mem, prev_r, prev_w, full, M=M, S=S, N=N, max_shift=max_shift)
    for got, want in zip(out, ref):
        assert got.shape == want.shape and got.dtype == want.dtype
        assert jnp.allclose(got, want, atol=1e-3, rtol=1e-3), (
            float(jnp.max(jnp.abs(got - want))))

    print("KERNEL_OK")
</pallas_src>

<mosaic_0001>
module attributes {stable_mosaic.version = 11 : i64} {
  func.func @_ntm_kernel(%arg0: memref<8x16xf32, #tpu.memory_space<vmem>>, %arg1: memref<8x32xf32, #tpu.memory_space<vmem>>, %arg2: memref<8x512xf32, #tpu.memory_space<vmem>>, %arg3: memref<8x16xf32, #tpu.memory_space<vmem>>, %arg4: memref<8x16xf32, #tpu.memory_space<vmem>>, %arg5: memref<16x128xf32, #tpu.memory_space<vmem>>, %arg6: memref<32x128xf32, #tpu.memory_space<vmem>>, %arg7: memref<1x128xf32, #tpu.memory_space<vmem>>, %arg8: memref<1x128xf32, #tpu.memory_space<vmem>>, %arg9: memref<32x96xf32, #tpu.memory_space<vmem>>, %arg10: memref<32x36xf32, #tpu.memory_space<vmem>>, %arg11: memref<1x36xf32, #tpu.memory_space<vmem>>, %arg12: memref<32x100xf32, #tpu.memory_space<vmem>>, %arg13: memref<1x100xf32, #tpu.memory_space<vmem>>, %arg14: memref<32x512xf32, #tpu.memory_space<vmem>>, %arg15: memref<512x32xf32, #tpu.memory_space<vmem>>, %arg16: memref<16x512xf32, #tpu.memory_space<vmem>>, %arg17: memref<512x16xf32, #tpu.memory_space<vmem>>, %arg18: memref<16x48xf32, #tpu.memory_space<vmem>>, %arg19: memref<8x576xf32, #tpu.memory_space<vmem>>) attributes {dimension_semantics = [], scalar_prefetch = 0 : i64, scratch_operands = 0 : i64, tpu.core_type = #tpu.core_type<tc>} {
    %c0 = arith.constant 0 : index
    %c0_0 = arith.constant 0 : index
    %0 = vector.load %arg0[%c0, %c0_0] : memref<8x16xf32, #tpu.memory_space<vmem>>, vector<8x16xf32>
    %c0_1 = arith.constant 0 : index
    %c0_2 = arith.constant 0 : index
    %1 = vector.load %arg1[%c0_1, %c0_2] : memref<8x32xf32, #tpu.memory_space<vmem>>, vector<8x32xf32>
    %c0_3 = arith.constant 0 : index
    %c0_4 = arith.constant 0 : index
    %2 = vector.load %arg2[%c0_3, %c0_4] : memref<8x512xf32, #tpu.memory_space<vmem>>, vector<8x512xf32>
    %c0_5 = arith.constant 0 : index
    %c0_6 = arith.constant 0 : index
    %3 = vector.load %arg14[%c0_5, %c0_6] : memref<32x512xf32, #tpu.memory_space<vmem>>, vector<32x512xf32>
    %c0_7 = arith.constant 0 : index
    %c0_8 = arith.constant 0 : index
    %4 = vector.load %arg16[%c0_7, %c0_8] : memref<16x512xf32, #tpu.memory_space<vmem>>, vector<16x512xf32>
    %c0_9 = arith.constant 0 : index
    %c0_10 = arith.constant 0 : index
    %5 = vector.load %arg5[%c0_9, %c0_10] : memref<16x128xf32, #tpu.memory_space<vmem>>, vector<16x128xf32>
    %cst = arith.constant dense<0.000000e+00> : vector<8x128xf32>
    %6 = tpu.matmul %0, %5, %cst {dimension_numbers = #tpu.dot_dimension_numbers<[1], [0], [0], [1], [0, 0, 1, 1], [], []>} : vector<8x16xf32>, vector<16x128xf32>, vector<8x128xf32> -> vector<8x128xf32>
    %c0_11 = arith.constant 0 : index
    %c0_12 = arith.constant 0 : index
    %7 = vector.load %arg7[%c0_11, %c0_12] : memref<1x128xf32, #tpu.memory_space<vmem>>, vector<1x128xf32>
    %8 = vector.broadcast %7 : vector<1x128xf32> to vector<8x128xf32>
    %9 = arith.addf %6, %8 : vector<8x128xf32>
    %c0_13 = arith.constant 0 : index
    %c0_14 = arith.constant 0 : index
    %10 = vector.load %arg6[%c0_13, %c0_14] : memref<32x128xf32, #tpu.memory_space<vmem>>, vector<32x128xf32>
    %cst_15 = arith.constant dense<0.000000e+00> : vector<8x128xf32>
    %11 = tpu.matmul %1, %10, %cst_15 {dimension_numbers = #tpu.dot_dimension_numbers<[1], [0], [0], [1], [0, 0, 1, 1], [], []>} : vector<8x32xf32>, vector<32x128xf32>, vector<8x128xf32> -> vector<8x128xf32>
    %c0_16 = arith.constant 0 : index
    %c0_17 = arith.constant 0 : index
    %12 = vector.load %arg8[%c0_16, %c0_17] : memref<1x128xf32, #tpu.memory_space<vmem>>, vector<1x128xf32>
    %13 = vector.broadcast %12 : vector<1x128xf32> to vector<8x128xf32>
    %14 = arith.addf %11, %13 : vector<8x128xf32>
    %15 = vector.extract_strided_slice %9 {offsets = [0, 0], sizes = [8, 32], strides = [1, 1]} : vector<8x128xf32> to vector<8x32xf32>
    %16 = vector.extract_strided_slice %14 {offsets = [0, 0], sizes = [8, 32], strides = [1, 1]} : vector<8x128xf32> to vector<8x32xf32>
    %17 = arith.addf %15, %16 : vector<8x32xf32>
    %cst_18 = arith.constant 0.000000e+00 : f32
    %18 = vector.broadcast %cst_18 : f32 to vector<8x32xf32>
    %19 = arith.maximumf %17, %18 : vector<8x32xf32>
    %20 = vector.extract_strided_slice %9 {offsets = [0, 32], sizes = [8, 96], strides = [1, 1]} : vector<8x128xf32> to vector<8x96xf32>
    %21 = vector.extract_strided_slice %14 {offsets = [0, 32], sizes = [8, 96], strides = [1, 1]} : vector<8x128xf32> to vector<8x96xf32>
    %c0_19 = arith.constant 0 : index
    %c0_20 = arith.constant 0 : index
    %22 = vector.load %arg10[%c0_19, %c0_20] : memref<32x36xf32, #tpu.memory_space<vmem>>, vector<32x36xf32>
    %cst_21 = arith.constant dense<0.000000e+00> : vector<8x36xf32>
    %23 = tpu.matmul %19, %22, %cst_21 {dimension_numbers = #tpu.dot_dimension_numbers<[1], [0], [0], [1], [0, 0, 1, 1], [], []>} : vector<8x32xf32>, vector<32x36xf32>, vector<8x36xf32> -> vector<8x36xf32>
    %c0_22 = arith.constant 0 : index
    %c0_23 = arith.constant 0 : index
    %24 = vector.load %arg11[%c0_22, %c0_23] : memref<1x36xf32, #tpu.memory_space<vmem>>, vector<1x36xf32>
    %25 = vector.broadcast %24 : vector<1x36xf32> to vector<8x36xf32>
    %26 = arith.addf %23, %25 : vector<8x36xf32>
    %c0_24 = arith.constant 0 : index
    %c0_25 = arith.constant 0 : index
    %27 = vector.load %arg3[%c0_24, %c0_25] : memref<8x16xf32, #tpu.memory_space<vmem>>, vector<8x16xf32>
    %28 = vector.extract_strided_slice %26 {offsets = [0, 0], sizes = [8, 32], strides = [1, 1]} : vector<8x36xf32> to vector<8x32xf32>
    %29 = vector.extract_strided_slice %26 {offsets = [0, 32], sizes = [8, 1], strides = [1, 1]} : vector<8x36xf32> to vector<8x1xf32>
    %30 = arith.negf %29 : vector<8x1xf32>
    %31 = math.exp %30 : vector<8x1xf32>
    %cst_26 = arith.constant 1.000000e+00 : f32
    %32 = vector.broadcast %cst_26 : f32 to vector<8x1xf32>
    %33 = arith.addf %32, %31 : vector<8x1xf32>
    %34 = arith.divf %32, %33 : vector<8x1xf32>
    %35 = vector.extract_strided_slice %26 {offsets = [0, 33], sizes = [8, 3], strides = [1, 1]} : vector<8x36xf32> to vector<8x3xf32>
    %cst_27 = arith.constant dense<0xFF800000> : vector<8xf32>
    %36 = vector.multi_reduction <maximumf>, %35, %cst_27 [1] : vector<8x3xf32> to vector<8xf32>
    %37 = vector.shape_cast %36 : vector<8xf32> to vector<8x1xf32>
    %38 = vector.broadcast %37 : vector<8x1xf32> to vector<8x3xf32>
    %39 = arith.subf %35, %38 : vector<8x3xf32>
    %40 = math.exp %39 : vector<8x3xf32>
    %cst_28 = arith.constant dense<0.000000e+00> : vector<8xf32>
    %41 = vector.multi_reduction <add>, %40, %cst_28 [1] : vector<8x3xf32> to vector<8xf32>
    %42 = vector.shape_cast %41 : vector<8xf32> to vector<8x1xf32>
    %43 = tpu.reciprocal %42 : vector<8x1xf32> -> vector<8x1xf32>
    %44 = vector.broadcast %43 : vector<8x1xf32> to vector<8x3xf32>
    %45 = arith.mulf %40, %44 : vector<8x3xf32>
    %cst_29 = arith.constant dense<0.000000e+00> : vector<8x512xf32>
    %46 = tpu.matmul %28, %3, %cst_29 {dimension_numbers = #tpu.dot_dimension_numbers<[1], [0], [0], [1], [0, 0, 1, 1], [], []>} : vector<8x32xf32>, vector<32x512xf32>, vector<8x512xf32> -> vector<8x512xf32>
    %47 = arith.mulf %2, %46 : vector<8x512xf32>
    %c0_30 = arith.constant 0 : index
    %c0_31 = arith.constant 0 : index
    %48 = vector.load %arg17[%c0_30, %c0_31] : memref<512x16xf32, #tpu.memory_space<vmem>>, vector<512x16xf32>
    %cst_32 = arith.constant dense<0.000000e+00> : vector<8x16xf32>
    %49 = tpu.matmul %47, %48, %cst_32 {dimension_numbers = #tpu.dot_dimension_numbers<[1], [0], [0], [1], [0, 0, 1, 1], [], []>} : vector<8x512xf32>, vector<512x16xf32>, vector<8x16xf32> -> vector<8x16xf32>
    %cst_33 = arith.constant 0.176776692 : f32
    %50 = vector.broadcast %cst_33 : f32 to vector<8x16xf32>
    %51 = arith.mulf %49, %50 : vector<8x16xf32>
    %cst_34 = arith.constant dense<0xFF800000> : vector<8xf32>
    %52 = vector.multi_reduction <maximumf>, %51, %cst_34 [1] : vector<8x16xf32> to vector<8xf32>
    %53 = vector.shape_cast %52 : vector<8xf32> to vector<8x1xf32>
    %54 = vector.broadcast %53 : vector<8x1xf32> to vector<8x16xf32>
    %55 = arith.subf %51, %54 : vector<8x16xf32>
    %56 = math.exp %55 : vector<8x16xf32>
    %cst_35 = arith.constant dense<0.000000e+00> : vector<8xf32>
    %57 = vector.multi_reduction <add>, %56, %cst_35 [1] : vector<8x16xf32> to vector<8xf32>
    %58 = vector.shape_cast %57 : vector<8xf32> to vector<8x1xf32>
    %59 = tpu.reciprocal %58 : vector<8x1xf32> -> vector<8x1xf32>
    %60 = vector.broadcast %59 : vector<8x1xf32> to vector<8x16xf32>
    %61 = arith.mulf %56, %60 : vector<8x16xf32>
    %62 = vector.broadcast %34 : vector<8x1xf32> to vector<8x16xf32>
    %63 = arith.mulf %62, %61 : vector<8x16xf32>
    %cst_36 = arith.constant 1.000000e+00 : f32
    %64 = vector.broadcast %cst_36 : f32 to vector<8x1xf32>
    %65 = arith.subf %64, %34 : vector<8x1xf32>
    %66 = vector.broadcast %65 : vector<8x1xf32> to vector<8x16xf32>
    %67 = arith.mulf %66, %27 : vector<8x16xf32>
    %68 = arith.addf %63, %67 : vector<8x16xf32>
    %c0_37 = arith.constant 0 : index
    %c0_38 = arith.constant 0 : index
    %69 = vector.load %arg18[%c0_37, %c0_38] : memref<16x48xf32, #tpu.memory_space<vmem>>, vector<16x48xf32>
    %cst_39 = arith.constant dense<0.000000e+00> : vector<8x48xf32>
    %70 = tpu.matmul %68, %69, %cst_39 {dimension_numbers = #tpu.dot_dimension_numbers<[1], [0], [0], [1], [0, 0, 1, 1], [], []>} : vector<8x16xf32>, vector<16x48xf32>, vector<8x48xf32> -> vector<8x48xf32>
    %71 = vector.extract_strided_slice %45 {offsets = [0, 0], sizes = [8, 1], strides = [1, 1]} : vector<8x3xf32> to vector<8x1xf32>
    %72 = vector.extract_strided_slice %70 {offsets = [0, 0], sizes = [8, 16], strides = [1, 1]} : vector<8x48xf32> to vector<8x16xf32>
    %73 = vector.broadcast %71 : vector<8x1xf32> to vector<8x16xf32>
    %74 = arith.mulf %73, %72 : vector<8x16xf32>
    %75 = vector.extract_strided_slice %45 {offsets = [0, 1], sizes = [8, 1], strides = [1, 1]} : vector<8x3xf32> to vector<8x1xf32>
    %76 = vector.extract_strided_slice %70 {offsets = [0, 16], sizes = [8, 16], strides = [1, 1]} : vector<8x48xf32> to vector<8x16xf32>
    %77 = vector.broadcast %75 : vector<8x1xf32> to vector<8x16xf32>
    %78 = arith.mulf %77, %76 : vector<8x16xf32>
    %79 = arith.addf %74, %78 : vector<8x16xf32>
    %80 = vector.extract_strided_slice %45 {offsets = [0, 2], sizes = [8, 1], strides = [1, 1]} : vector<8x3xf32> to vector<8x1xf32>
    %81 = vector.extract_strided_slice %70 {offsets = [0, 32], sizes = [8, 16], strides = [1, 1]} : vector<8x48xf32> to vector<8x16xf32>
    %82 = vector.broadcast %80 : vector<8x1xf32> to vector<8x16xf32>
    %83 = arith.mulf %82, %81 : vector<8x16xf32>
    %84 = arith.addf %79, %83 : vector<8x16xf32>
    %cst_40 = arith.constant dense<0.000000e+00> : vector<8x512xf32>
    %85 = tpu.matmul %84, %4, %cst_40 {dimension_numbers = #tpu.dot_dimension_numbers<[1], [0], [0], [1], [0, 0, 1, 1], [], []>} : vector<8x16xf32>, vector<16x512xf32>, vector<8x512xf32> -> vector<8x512xf32>
    %86 = arith.mulf %2, %85 : vector<8x512xf32>
    %c0_41 = arith.constant 0 : index
    %c0_42 = arith.constant 0 : index
    %87 = vector.load %arg15[%c0_41, %c0_42] : memref<512x32xf32, #tpu.memory_space<vmem>>, vector<512x32xf32>
    %cst_43 = arith.constant dense<0.000000e+00> : vector<8x32xf32>
    %88 = tpu.matmul %86, %87, %cst_43 {dimension_numbers = #tpu.dot_dimension_numbers<[1], [0], [0], [1], [0, 0, 1, 1], [], []>} : vector<8x512xf32>, vector<512x32xf32>, vector<8x32xf32> -> vector<8x32xf32>
    %c0_44 = arith.constant 0 : index
    %c0_45 = arith.constant 0 : index
    %89 = vector.load %arg9[%c0_44, %c0_45] : memref<32x96xf32, #tpu.memory_space<vmem>>, vector<32x96xf32>
    %cst_46 = arith.constant dense<0.000000e+00> : vector<8x96xf32>
    %90 = tpu.matmul %88, %89, %cst_46 {dimension_numbers = #tpu.dot_dimension_numbers<[1], [0], [0], [1], [0, 0, 1, 1], [], []>} : vector<8x32xf32>, vector<32x96xf32>, vector<8x96xf32> -> vector<8x96xf32>
    %91 = arith.addf %20, %90 : vector<8x96xf32>
    %92 = vector.extract_strided_slice %91 {offsets = [0, 0], sizes = [8, 32], strides = [1, 1]} : vector<8x96xf32> to vector<8x32xf32>
    %93 = vector.extract_strided_slice %21 {offsets = [0, 0], sizes = [8, 32], strides = [1, 1]} : vector<8x96xf32> to vector<8x32xf32>
    %94 = arith.addf %92, %93 : vector<8x32xf32>
    %95 = arith.negf %94 : vector<8x32xf32>
    %96 = math.exp %95 : vector<8x32xf32>
    %cst_47 = arith.constant 1.000000e+00 : f32
    %97 = vector.broadcast %cst_47 : f32 to vector<8x32xf32>
    %98 = arith.addf %97, %96 : vector<8x32xf32>
    %99 = arith.divf %97, %98 : vector<8x32xf32>
    %100 = vector.extract_strided_slice %91 {offsets = [0, 32], sizes = [8, 32], strides = [1, 1]} : vector<8x96xf32> to vector<8x32xf32>
    %101 = vector.extract_strided_slice %21 {offsets = [0, 32], sizes = [8, 32], strides = [1, 1]} : vector<8x96xf32> to vector<8x32xf32>
    %102 = arith.addf %100, %101 : vector<8x32xf32>
    %103 = arith.negf %102 : vector<8x32xf32>
    %104 = math.exp %103 : vector<8x32xf32>
    %cst_48 = arith.constant 1.000000e+00 : f32
    %105 = vector.broadcast %cst_48 : f32 to vector<8x32xf32>
    %106 = arith.addf %105, %104 : vector<8x32xf32>
    %107 = arith.divf %105, %106 : vector<8x32xf32>
    %108 = vector.extract_strided_slice %91 {offsets = [0, 64], sizes = [8, 32], strides = [1, 1]} : vector<8x96xf32> to vector<8x32xf32>
    %109 = vector.extract_strided_slice %21 {offsets = [0, 64], sizes = [8, 32], strides = [1, 1]} : vector<8x96xf32> to vector<8x32xf32>
    %110 = arith.mulf %99, %109 : vector<8x32xf32>
    %111 = arith.addf %108, %110 : vector<8x32xf32>
    %112 = math.tanh %111 : vector<8x32xf32>
    %cst_49 = arith.constant 1.000000e+00 : f32
    %113 = vector.broadcast %cst_49 : f32 to vector<8x32xf32>
    %114 = arith.subf %113, %107 : vector<8x32xf32>
    %115 = arith.mulf %114, %112 : vector<8x32xf32>
    %116 = arith.mulf %107, %1 : vector<8x32xf32>
    %117 = arith.addf %115, %116 : vector<8x32xf32>
    %c0_50 = arith.constant 0 : index
    %c0_51 = arith.constant 0 : index
    %118 = vector.load %arg12[%c0_50, %c0_51] : memref<32x100xf32, #tpu.memory_space<vmem>>, vector<32x100xf32>
    %cst_52 = arith.constant dense<0.000000e+00> : vector<8x100xf32>
    %119 = tpu.matmul %117, %118, %cst_52 {dimension_numbers = #tpu.dot_dimension_numbers<[1], [0], [0], [1], [0, 0, 1, 1], [], []>} : vector<8x32xf32>, vector<32x100xf32>, vector<8x100xf32> -> vector<8x100xf32>
    %c0_53 = arith.constant 0 : index
    %c0_54 = arith.constant 0 : index
    %120 = vector.load %arg13[%c0_53, %c0_54] : memref<1x100xf32, #tpu.memory_space<vmem>>, vector<1x100xf32>
    %121 = vector.broadcast %120 : vector<1x100xf32> to vector<8x100xf32>
    %122 = arith.addf %119, %121 : vector<8x100xf32>
    %123 = vector.extract_strided_slice %122 {offsets = [0, 0], sizes = [8, 36], strides = [1, 1]} : vector<8x100xf32> to vector<8x36xf32>
    %c0_55 = arith.constant 0 : index
    %c0_56 = arith.constant 0 : index
    %124 = vector.load %arg4[%c0_55, %c0_56] : memref<8x16xf32, #tpu.memory_space<vmem>>, vector<8x16xf32>
    %125 = vector.extract_strided_slice %123 {offsets = [0, 0], sizes = [8, 32], strides = [1, 1]} : vector<8x36xf32> to vector<8x32xf32>
    %126 = vector.extract_strided_slice %123 {offsets = [0, 32], sizes = [8, 1], strides = [1, 1]} : vector<8x36xf32> to vector<8x1xf32>
    %127 = arith.negf %126 : vector<8x1xf32>
    %128 = math.exp %127 : vector<8x1xf32>
    %cst_57 = arith.constant 1.000000e+00 : f32
    %129 = vector.broadcast %cst_57 : f32 to vector<8x1xf32>
    %130 = arith.addf %129, %128 : vector<8x1xf32>
    %131 = arith.divf %129, %130 : vector<8x1xf32>
    %132 = vector.extract_strided_slice %123 {offsets = [0, 33], sizes = [8, 3], strides = [1, 1]} : vector<8x36xf32> to vector<8x3xf32>
    %cst_58 = arith.constant dense<0xFF800000> : vector<8xf32>
    %133 = vector.multi_reduction <maximumf>, %132, %cst_58 [1] : vector<8x3xf32> to vector<8xf32>
    %134 = vector.shape_cast %133 : vector<8xf32> to vector<8x1xf32>
    %135 = vector.broadcast %134 : vector<8x1xf32> to vector<8x3xf32>
    %136 = arith.subf %132, %135 : vector<8x3xf32>
    %137 = math.exp %136 : vector<8x3xf32>
    %cst_59 = arith.constant dense<0.000000e+00> : vector<8xf32>
    %138 = vector.multi_reduction <add>, %137, %cst_59 [1] : vector<8x3xf32> to vector<8xf32>
    %139 = vector.shape_cast %138 : vector<8xf32> to vector<8x1xf32>
    %140 = tpu.reciprocal %139 : vector<8x1xf32> -> vector<8x1xf32>
    %141 = vector.broadcast %140 : vector<8x1xf32> to vector<8x3xf32>
    %142 = arith.mulf %137, %141 : vector<8x3xf32>
    %cst_60 = arith.constant dense<0.000000e+00> : vector<8x512xf32>
    %143 = tpu.matmul %125, %3, %cst_60 {dimension_numbers = #tpu.dot_dimension_numbers<[1], [0], [0], [1], [0, 0, 1, 1], [], []>} : vector<8x32xf32>, vector<32x512xf32>, vector<8x512xf32> -> vector<8x512xf32>
    %144 = arith.mulf %2, %143 : vector<8x512xf32>
    %c0_61 = arith.constant 0 : index
    %c0_62 = arith.constant 0 : index
    %145 = vector.load %arg17[%c0_61, %c0_62] : memref<512x16xf32, #tpu.memory_space<vmem>>, vector<512x16xf32>
    %cst_63 = arith.constant dense<0.000000e+00> : vector<8x16xf32>
    %146 = tpu.matmul %144, %145, %cst_63 {dimension_numbers = #tpu.dot_dimension_numbers<[1], [0], [0], [1], [0, 0, 1, 1], [], []>} : vector<8x512xf32>, vector<512x16xf32>, vector<8x16xf32> -> vector<8x16xf32>
    %cst_64 = arith.constant 0.176776692 : f32
    %147 = vector.broadcast %cst_64 : f32 to vector<8x16xf32>
    %148 = arith.mulf %146, %147 : vector<8x16xf32>
    %cst_65 = arith.constant dense<0xFF800000> : vector<8xf32>
    %149 = vector.multi_reduction <maximumf>, %148, %cst_65 [1] : vector<8x16xf32> to vector<8xf32>
    %150 = vector.shape_cast %149 : vector<8xf32> to vector<8x1xf32>
    %151 = vector.broadcast %150 : vector<8x1xf32> to vector<8x16xf32>
    %152 = arith.subf %148, %151 : vector<8x16xf32>
    %153 = math.exp %152 : vector<8x16xf32>
    %cst_66 = arith.constant dense<0.000000e+00> : vector<8xf32>
    %154 = vector.multi_reduction <add>, %153, %cst_66 [1] : vector<8x16xf32> to vector<8xf32>
    %155 = vector.shape_cast %154 : vector<8xf32> to vector<8x1xf32>
    %156 = tpu.reciprocal %155 : vector<8x1xf32> -> vector<8x1xf32>
    %157 = vector.broadcast %156 : vector<8x1xf32> to vector<8x16xf32>
    %158 = arith.mulf %153, %157 : vector<8x16xf32>
    %159 = vector.broadcast %131 : vector<8x1xf32> to vector<8x16xf32>
    %160 = arith.mulf %159, %158 : vector<8x16xf32>
    %cst_67 = arith.constant 1.000000e+00 : f32
    %161 = vector.broadcast %cst_67 : f32 to vector<8x1xf32>
    %162 = arith.subf %161, %131 : vector<8x1xf32>
    %163 = vector.broadcast %162 : vector<8x1xf32> to vector<8x16xf32>
    %164 = arith.mulf %163, %124 : vector<8x16xf32>
    %165 = arith.addf %160, %164 : vector<8x16xf32>
    %c0_68 = arith.constant 0 : index
    %c0_69 = arith.constant 0 : index
    %166 = vector.load %arg18[%c0_68, %c0_69] : memref<16x48xf32, #tpu.memory_space<vmem>>, vector<16x48xf32>
    %cst_70 = arith.constant dense<0.000000e+00> : vector<8x48xf32>
    %167 = tpu.matmul %165, %166, %cst_70 {dimension_numbers = #tpu.dot_dimension_numbers<[1], [0], [0], [1], [0, 0, 1, 1], [], []>} : vector<8x16xf32>, vector<16x48xf32>, vector<8x48xf32> -> vector<8x48xf32>
    %168 = vector.extract_strided_slice %142 {offsets = [0, 0], sizes = [8, 1], strides = [1, 1]} : vector<8x3xf32> to vector<8x1xf32>
    %169 = vector.extract_strided_slice %167 {offsets = [0, 0], sizes = [8, 16], strides = [1, 1]} : vector<8x48xf32> to vector<8x16xf32>
    %170 = vector.broadcast %168 : vector<8x1xf32> to vector<8x16xf32>
    %171 = arith.mulf %170, %169 : vector<8x16xf32>
    %172 = vector.extract_strided_slice %142 {offsets = [0, 1], sizes = [8, 1], strides = [1, 1]} : vector<8x3xf32> to vector<8x1xf32>
    %173 = vector.extract_strided_slice %167 {offsets = [0, 16], sizes = [8, 16], strides = [1, 1]} : vector<8x48xf32> to vector<8x16xf32>
    %174 = vector.broadcast %172 : vector<8x1xf32> to vector<8x16xf32>
    %175 = arith.mulf %174, %173 : vector<8x16xf32>
    %176 = arith.addf %171, %175 : vector<8x16xf32>
    %177 = vector.extract_strided_slice %142 {offsets = [0, 2], sizes = [8, 1], strides = [1, 1]} : vector<8x3xf32> to vector<8x1xf32>
    %178 = vector.extract_strided_slice %167 {offsets = [0, 32], sizes = [8, 16], strides = [1, 1]} : vector<8x48xf32> to vector<8x16xf32>
    %179 = vector.broadcast %177 : vector<8x1xf32> to vector<8x16xf32>
    %180 = arith.mulf %179, %178 : vector<8x16xf32>
    %181 = arith.addf %176, %180 : vector<8x16xf32>
    %182 = vector.extract_strided_slice %122 {offsets = [0, 36], sizes = [8, 32], strides = [1, 1]} : vector<8x100xf32> to vector<8x32xf32>
    %183 = arith.negf %182 : vector<8x32xf32>
    %184 = math.exp %183 : vector<8x32xf32>
    %cst_71 = arith.constant 1.000000e+00 : f32
    %185 = vector.broadcast %cst_71 : f32 to vector<8x32xf32>
    %186 = arith.addf %185, %184 : vector<8x32xf32>
    %187 = arith.divf %185, %186 : vector<8x32xf32>
    %188 = vector.extract_strided_slice %122 {offsets = [0, 68], sizes = [8, 32], strides = [1, 1]} : vector<8x100xf32> to vector<8x32xf32>
    %cst_72 = arith.constant dense<0.000000e+00> : vector<8x512xf32>
    %189 = tpu.matmul %181, %4, %cst_72 {dimension_numbers = #tpu.dot_dimension_numbers<[1], [0], [0], [1], [0, 0, 1, 1], [], []>} : vector<8x16xf32>, vector<16x512xf32>, vector<8x512xf32> -> vector<8x512xf32>
    %cst_73 = arith.constant dense<0.000000e+00> : vector<8x512xf32>
    %190 = tpu.matmul %187, %3, %cst_73 {dimension_numbers = #tpu.dot_dimension_numbers<[1], [0], [0], [1], [0, 0, 1, 1], [], []>} : vector<8x32xf32>, vector<32x512xf32>, vector<8x512xf32> -> vector<8x512xf32>
    %cst_74 = arith.constant dense<0.000000e+00> : vector<8x512xf32>
    %191 = tpu.matmul %188, %3, %cst_74 {dimension_numbers = #tpu.dot_dimension_numbers<[1], [0], [0], [1], [0, 0, 1, 1], [], []>} : vector<8x32xf32>, vector<32x512xf32>, vector<8x512xf32> -> vector<8x512xf32>
    %192 = arith.mulf %189, %190 : vector<8x512xf32>
    %cst_75 = arith.constant 1.000000e+00 : f32
    %193 = vector.broadcast %cst_75 : f32 to vector<8x512xf32>
    %194 = arith.subf %193, %192 : vector<8x512xf32>
    %195 = arith.mulf %194, %2 : vector<8x512xf32>
    %196 = arith.mulf %189, %191 : vector<8x512xf32>
    %197 = arith.addf %195, %196 : vector<8x512xf32>
    %c0_76 = arith.constant 0 : index
    %c0_77 = arith.constant 0 : index
    %198 = vector.load %arg19[%c0_76, %c0_77] : memref<8x576xf32, #tpu.memory_space<vmem>>, vector<8x512xf32>
    tpu.vector_store %arg19[%c0_76, %c0_77], %197 {strides = array<i32>} : memref<8x576xf32, #tpu.memory_space<vmem>>, vector<8x512xf32>,
    %c0_78 = arith.constant 0 : index
    %c512 = arith.constant 512 : index
    %199 = vector.load %arg19[%c0_78, %c512] : memref<8x576xf32, #tpu.memory_space<vmem>>, vector<8x32xf32>
    tpu.vector_store %arg19[%c0_78, %c512], %117 {strides = array<i32>} : memref<8x576xf32, #tpu.memory_space<vmem>>, vector<8x32xf32>,
    %c0_79 = arith.constant 0 : index
    %c544 = arith.constant 544 : index
    %200 = vector.load %arg19[%c0_79, %c544] : memref<8x576xf32, #tpu.memory_space<vmem>>, vector<8x16xf32>
    tpu.vector_store %arg19[%c0_79, %c544], %84 {strides = array<i32>} : memref<8x576xf32, #tpu.memory_space<vmem>>, vector<8x16xf32>,
    %c0_80 = arith.constant 0 : index
    %c560 = arith.constant 560 : index
    %201 = vector.load %arg19[%c0_80, %c560] : memref<8x576xf32, #tpu.memory_space<vmem>>, vector<8x16xf32>
    tpu.vector_store %arg19[%c0_80, %c560], %181 {strides = array<i32>} : memref<8x576xf32, #tpu.memory_space<vmem>>, vector<8x16xf32>,
    return
  }
}

</mosaic_0001>

<bundles_post_ra>
// kernel: tpu_custom_call.1
= control target key start
LH: loop header
LB: loop body
LE: loop exit
PB: predicated region body
PF: predicated region fallthrough
CT: control target
= control target key end

     0   :  { %s4005_s0 = inlined_call_operand.vmem [shape: f32[8,16], index: 0, kind: input, shape index: {}]   ;;  %s4006_s1 = inlined_call_operand.vmem [shape: f32[8,32], index: 1, kind: input, shape index: {}]   ;;  %s4007_s2 = inlined_call_operand.vmem [shape: f32[8,512], index: 2, kind: input, shape index: {}]   ;;  %s4008_s3 = inlined_call_operand.vmem [shape: f32[8,16], index: 3, kind: input, shape index: {}]   ;;  %s4009_s4 = inlined_call_operand.vmem [shape: f32[8,16], index: 4, kind: input, shape index: {}]   ;;  %s4010_s5 = inlined_call_operand.vmem [shape: f32[16,128], index: 5, kind: input, shape index: {}]   ;;  %s4011_s6 = inlined_call_operand.vmem [shape: f32[32,128], index: 6, kind: input, shape index: {}]   ;;  %s4012_s7 = inlined_call_operand.vmem [shape: f32[1,128], index: 7, kind: input, shape index: {}]   ;;  %s4013_s8 = inlined_call_operand.vmem [shape: f32[1,128], index: 8, kind: input, shape index: {}]   ;;  %s4014_s9 = inlined_call_operand.vmem [shape: f32[32,96], index: 9, kind: input, shape index: {}]   ;;  %s4015_s10 = inlined_call_operand.vmem [shape: f32[32,36], index: 10, kind: input, shape index: {}]   ;;  %s4016_s11 = inlined_call_operand.vmem [shape: f32[1,36], index: 11, kind: input, shape index: {}]   ;;  %s4017_s12 = inlined_call_operand.vmem [shape: f32[32,100], index: 12, kind: input, shape index: {}]   ;;  %s4018_s13 = inlined_call_operand.vmem [shape: f32[1,100], index: 13, kind: input, shape index: {}]   ;;  %s4019_s14 = inlined_call_operand.vmem [shape: f32[32,512], index: 14, kind: input, shape index: {}]   ;;  %s4020_s15 = inlined_call_operand.vmem [shape: f32[512,32], index: 15, kind: input, shape index: {}]   ;;  %s4021_s16 = inlined_call_operand.vmem [shape: f32[16,512], index: 16, kind: input, shape index: {}]   ;;  %s4022_s17 = inlined_call_operand.vmem [shape: f32[512,16], index: 17, kind: input, shape index: {}]   ;;  %s4023_s18 = inlined_call_operand.vmem [shape: f32[16,48], index: 18, kind: input, shape index: {}]   ;;  %s4024_s19 = inlined_call_operand.hbm [shape: f32[8,576], index: 19, kind: output, shape index: {}]  }
   0x1   :  { %4080 = sst [smem:[#allocation50_spill]] %s4005_s0 }
   0x2   :  { %4081 = sst [smem:[#allocation51_spill]] %s4006_s1 }
   0x3   :  { %4082 = sst [smem:[#allocation52_spill]] %s4007_s2 }
   0x4   :  { %4083 = sst [smem:[#allocation53_spill]] %s4008_s3 }
   0x5   :  { %v179_v0 = vld [vmem:[%s4011_s6 + $0x18] sm:$0xff]  ;;  %v94_v1 = vld [vmem:[%s4010_s5 + $0x8] sm:$0xff]  ;;  %v4027_v2 = vmov 0.0   ;;  %v178_v3 = vld [vmem:[%s4011_s6 + $0x10] sm:$0xff]  ;;  %s4084_s27 = sld [smem:[#allocation50_spill]]  ;;  %vm102_vm0 = vcmask 130048  }
   0x6   :  { %2596 = vmatprep.subr.mxu1 %v4027_v2  ;;  %2589 = vmatprep.subr.mxu0 %v4027_v2  ;;  %v93_v4 = vld [vmem:[%s4010_s5] sm:$0xff]  ;;  %v177_v5 = vld [vmem:[%s4011_s6 + $0x8] sm:$0xff] }
   0x7   :  { %2597 = vmatpush3.msra.mxu1 %v179_v0  ;;  %2590 = vmatpush3.msra.mxu0 %v94_v1 }
   0x8   :  { %2598 = vmatprep.subr.mxu1 %v4027_v2  ;;  %2591 = vmatprep.subr.mxu0 %v4027_v2 }
   0xb   :  { %v63_v6 = vld [vmem:[%s4084_s27] sm:$0xff] }
   0xc   :  { %24 = vsyncpa [#allocation3], 0  ;;  %2599 = vmatpush3.msra.mxu1 %v178_v3  ;;  %2592 = vmatpush3.msra.mxu0 %v93_v4  ;;  %vm2754_vm1 = vmmov 0   ;;  %v176_v7 = vld [vmem:[%s4011_s6] sm:$0xff]  ;;  %s4085_s30 = sld [smem:[#allocation51_spill]]  ;;  %vm187_vm2 = vcmask 261120  }
   0xd   :  { %2600 = vmatprep.subr.mxu1 %v4027_v2  ;;  %2593 = vmatprep.mubr.msk.f32.mxu0 %vm2754_vm1, %v4027_v2  ;;  %v266_v9 = vld [vmem:[%s4015_s10 + $0x18] sm:$0xff]  ;;  %v265_v10 = vld [vmem:[%s4015_s10 + $0x10] sm:$0xff]  ;;  %v264_v11 = vld [vmem:[%s4015_s10 + $0x8] sm:$0xff]  ;;  %vm354_vm3 = vcmask 294152   ;;  %s2756_s23 = smov 95   ;;  %vm365_vm4 = vcmask 23552  }
   0xe   :  { %2601 = vmatpush3.msra.mxu1 %v177_v5  ;;  %2594 = vmatmul.mubr.msk.f32.vlgmr.msra.gmra.mxu0 %vm102_vm0, %v63_v6  ;;  %v263_v12 = vld [vmem:[%s4015_s10] sm:$0xff]  ;;  %v2926_v13 = vld [vmem:[%s4019_s14 + $0x68] sm:$0xff]  ;;  %v84_v14 = vld [vmem:[%s4019_s14 + $0x78] sm:$0xff]  ;;  %s4127_s27 = sld [smem:[#allocation53_spill]]  ;;  %s2761_s28 = smov 112   ;;  %vm2303_vm5 = vcmask 392448  }
   0xf   :  { %2602 = vmatprep.subr.mxu1 %v4027_v2  ;;  %2604 = vmatprep.mubr.msk.f32.mxu1 %vm2754_vm1, %v4027_v2  ;;  %v2934_v15 = vld [vmem:[%s4019_s14 + $0x60] sm:$0xff]  ;;  %v2940_v16 = vld [vmem:[%s4019_s14 + $0x48] sm:$0xff]  ;;  %v2971_v29 = vld [vmem:[%s4019_s14 + $0x70] sm:$0xff]  ;;  %s2765_s5 = smov 60   ;;  %vm2308_vm6 = vcmask 523648   ;;  %s2767_s20 = smov [#allocation2]  }
  0x10   :  { %2603 = vmatpush3.msra.mxu1 %v176_v7  ;;  %2607 = vmatprep.subr.mxu0 %v4027_v2  ;;  %v2946_v17 = vld [vmem:[%s4019_s14 + $0x40] sm:$0xff]  ;;  %v2952_v18 = vld [vmem:[%s4019_s14 + $0x28] sm:$0xff]  ;;  %v2976_v30 = vld [vmem:[%s4019_s14 + $0x58] sm:$0xff] }
  0x11   :  { %2615 = vmatprep.mubr.msk.f32.mxu0 %vm2754_vm1, %v4027_v2  ;;  %2608 = vmatpush3.msra.mxu0 %v266_v9  ;;  %v2324_v19 = vld [vmem:[%s4012_s7] ss:$0 sm:$0xff]  ;;  %v2982_v31 = vld [vmem:[%s4019_s14 + $0x50] sm:$0xff]  ;;  %v2988_v32 = vld [vmem:[%s4019_s14 + $0x38] sm:$0xff] }
  0x12   :  { %v64_v8 = vld [vmem:[%s4085_s30] sm:$0xff]  ;;  %2609 = vmatprep.subr.mxu0 %v4027_v2  ;;  %398 = vmatprep.subr.mxu1 %v2926_v13  ;;  %v3002_v34 = vld [vmem:[%s4019_s14 + $0x30] sm:$0xff]  ;;  %v3009_v35 = vld [vmem:[%s4019_s14 + $0x8] sm:$0xff] }
  0x13   :  { %2605 = vmatmul.mubr.msk.f32.vlgmr.msra.gmra.mxu1 %vm187_vm2, %v64_v8  ;;  %2610 = vmatpush3.msra.mxu0 %v265_v10  ;;  %v2326_v21 = vld [vmem:[%s4013_s8] ss:$0 sm:$0xff]  ;;  %v3014_v36 = vld [vmem:[%s4019_s14 + $0x18] sm:$0xff]  ;;  %v3026_v38 = vld [vmem:[%s4019_s14 + $0x10] sm:$0xff] }
  0x14   :  { %438 = vmatprep.mubr.f32.mxu1 %v4027_v2  ;;  %2611 = vmatprep.subr.mxu0 %v4027_v2  ;;  %v2997_v33 = vld [vmem:[%s4019_s14 + $0x20] sm:$0xff]  ;;  %v3033_v39 = vld [vmem:[%s4022_s17 + $0xf8] sm:$0xff]  ;;  %v3060_v47 = vld [vmem:[%s4022_s17 + $0xf0] sm:$0xff] }
  0x15   :  { %2612 = vmatpush3.msra.mxu0 %v264_v11  ;;  %399 = vmatpush1.msra.mxu1 %v2934_v15  ;;  %v3021_v37 = vld [vmem:[%s4019_s14] sm:$0xff]  ;;  %v3038_v40 = vld [vmem:[%s4022_s17 + $0x1f8] sm:$0xff]  ;;  %v3065_v48 = vld [vmem:[%s4022_s17 + $0x1f0] sm:$0xff] }
  0x16   :  { %2613 = vmatprep.subr.mxu0 %v4027_v2  ;;  %400 = vmatprep.subr.mxu1 %v2940_v16  ;;  %v2328_v41 = vld [vmem:[%s4016_s11] ss:$0 sm:$0xff]  ;;  %v3050_v44 = vld [vmem:[%s4022_s17 + $0x78] sm:$0xff]  ;;  %v3074_v49 = vld [vmem:[%s4022_s17 + $0x70] sm:$0xff]  ;;  %s4126_s11 = sld [smem:[#allocation52_spill]] }
  0x17   :  { %2614 = vmatpush3.msra.mxu0 %v263_v12  ;;  %401 = vmatpush1.msra.mxu1 %v2946_v17  ;;  %v3055_v45 = vld [vmem:[%s4022_s17 + $0x178] sm:$0xff]  ;;  %v3079_v50 = vld [vmem:[%s4022_s17 + $0x170] sm:$0xff]  ;;  %v3086_v51 = vld [vmem:[%s4022_s17 + $0xe8] sm:$0xff] }
  0x18   :  { %469 = vmatprep.subr.mxu0 %v84_v14  ;;  %402 = vmatprep.subr.mxu1 %v2952_v18  ;;  %v3091_v52 = vld [vmem:[%s4022_s17 + $0x1e8] sm:$0xff]  ;;  %v3110_v55 = vld [vmem:[%s4022_s17 + $0xe0] sm:$0xff]  ;;  %v3134_v59 = vld [vmem:[%s4022_s17 + $0xd8] sm:$0xff] }
  0x19   :  { %403 = vmatpush1.msra.mxu1 %v2997_v33  ;;  %v3098_v53 = vld [vmem:[%s4022_s17 + $0x68] sm:$0xff]  ;;  %v3115_v56 = vld [vmem:[%s4022_s17 + $0x1e0] sm:$0xff]  ;;  %v3139_v60 = vld [vmem:[%s4022_s17 + $0x1d8] sm:$0xff] }
  0x1a   :  { %404 = vmatprep.subr.mxu1 %v3009_v35  ;;  %v3103_v54 = vld [vmem:[%s4022_s17 + $0x168] sm:$0xff]  ;;  %v3122_v57 = vld [vmem:[%s4022_s17 + $0x60] sm:$0xff]  ;;  %v3146_v61 = vld [vmem:[%s4022_s17 + $0x58] sm:$0xff] }
  0x1b   :  { %405 = vmatpush1.msra.mxu1 %v3021_v37  ;;  %v3127_v58 = vld [vmem:[%s4022_s17 + $0x160] sm:$0xff]  ;;  %v3151_v62 = vld [vmem:[%s4022_s17 + $0x158] sm:$0xff]  ;;  %v3158_v63 = vld [vmem:[%s4022_s17 + $0xd0] sm:$0xff] }
  0x1c   :  { %2363 = vmatprep.subr.mxu1 %v3033_v39  ;;  %v3163_v0 = vld [vmem:[%s4022_s17 + $0x1d0] sm:$0xff]  ;;  %v3182_v4 = vld [vmem:[%s4022_s17 + $0xc8] sm:$0xff]  ;;  %v3206_v8 = vld [vmem:[%s4022_s17 + $0xc0] sm:$0xff] }
  0x1d   :  { %v3170_v1 = vld [vmem:[%s4022_s17 + $0x50] sm:$0xff]  ;;  %v3187_v5 = vld [vmem:[%s4022_s17 + $0x1c8] sm:$0xff]  ;;  %4089 = vst [vmem:[#allocation8_spill] sm:$0xff] %v3206_v8  ;;  %v3211_v9 = vld [vmem:[%s4022_s17 + $0x1c0] sm:$0xff] }
  0x1e   :  { %v3175_v3 = vld [vmem:[%s4022_s17 + $0x150] sm:$0xff]  ;;  %4086 = vst [vmem:[#allocation5_spill] sm:$0xff] %v3187_v5  ;;  %v3194_v6 = vld [vmem:[%s4022_s17 + $0x48] sm:$0xff]  ;;  %4090 = vst [vmem:[#allocation9_spill] sm:$0xff] %v3211_v9 }
  0x1f   :  { %4087 = vst [vmem:[#allocation6_spill] sm:$0xff] %v3194_v6  ;;  %v3199_v7 = vld [vmem:[%s4022_s17 + $0x148] sm:$0xff]  ;;  %v3218_v10 = vld [vmem:[%s4022_s17 + $0x40] sm:$0xff]  ;;  %v3230_v12 = vld [vmem:[%s4022_s17 + $0xb8] sm:$0xff] }
  0x20   :  { %4088 = vst [vmem:[#allocation7_spill] sm:$0xff] %v3199_v7  ;;  %4091 = vst [vmem:[#allocation10_spill] sm:$0xff] %v3218_v10  ;;  %v3223_v11 = vld [vmem:[%s4022_s17 + $0x140] sm:$0xff]  ;;  %v3235_v14 = vld [vmem:[%s4022_s17 + $0x1b8] sm:$0xff] }
  0x21   :  { %4092 = vst [vmem:[#allocation11_spill] sm:$0xff] %v3223_v11  ;;  %4093 = vst [vmem:[#allocation12_spill] sm:$0xff] %v3230_v12 }
  0x22   :  { %4094 = vst [vmem:[#allocation13_spill] sm:$0xff] %v3235_v14 }
  0xce   :  { %v172_v20 = vpop.f32.mrf.mxu0 }
  0xcf   :  { %v2962_v22 = vadd.f32 %v2324_v19, %v172_v20  ;;  %v3242_v19 = vld [vmem:[%s4022_s17 + $0x38] sm:$0xff] }
  0xd0   :  { %v2595_v23 = vpop.f32.mrf.mxu0  ;;  %4095 = vst [vmem:[#allocation14_spill] sm:$0xff] %v3242_v19  ;;  %v3247_v20 = vld [vmem:[%s4022_s17 + $0x138] sm:$0xff] }
  0xd1   :  { %4096 = vst [vmem:[#allocation15_spill] sm:$0xff] %v3247_v20  ;;  %v3259_v23 = vld [vmem:[%s4022_s17 + $0x1b0] sm:$0xff] }
  0xd2   :  { %4098 = vst [vmem:[#allocation17_spill] sm:$0xff] %v3259_v23 }
  0xd3   :  { %v257_v24 = vpop.f32.mrf.mxu1 }
  0xd4   :  { %v2964_v25 = vadd.f32 %v2326_v21, %v257_v24  ;;  %v3254_v21 = vld [vmem:[%s4022_s17 + $0xb0] sm:$0xff] }
  0xd5   :  { %v2606_v26 = vpop.f32.mrf.mxu1  ;;  %4097 = vst [vmem:[#allocation16_spill] sm:$0xff] %v3254_v21  ;;  %v3266_v24 = vld [vmem:[%s4022_s17 + $0x30] sm:$0xff] }
  0xd6   :  { %v261_v27 = vadd.f32 %v2964_v25, %v2962_v22  ;;  %4099 = vst [vmem:[#allocation18_spill] sm:$0xff] %v3266_v24  ;;  %v3271_v26 = vld [vmem:[%s4022_s17 + $0x130] sm:$0xff] }
  0xd7   :  { %4100 = vst [vmem:[#allocation19_spill] sm:$0xff] %v3271_v26 }
  0xd8   :  { %v262_v28 = vmax.f32 %v261_v27, 0.0  ;;  %v3278_v27 = vld [vmem:[%s4022_s17 + $0xa8] sm:$0xff] }
  0xd9   :  { %4101 = vst [vmem:[#allocation20_spill] sm:$0xff] %v3278_v27 }
  0xda   :  { %2616 = vmatmul.mubr.msk.f32.vlgmr.msra.gmra.mxu0 %vm187_vm2, %v262_v28  ;;  %v3283_v28 = vld [vmem:[%s4022_s17 + $0x1a8] sm:$0xff] }
  0xdb   :  { %470 = vmatpush1.msra.mxu0 %v2971_v29  ;;  %509 = vmatprep.mubr.f32.mxu0 %v4027_v2  ;;  %4102 = vst [vmem:[#allocation21_spill] sm:$0xff] %v3283_v28  ;;  %v3307_v2 = vld [vmem:[%s4022_s17 + $0x1a0] sm:$0xff] }
  0xdc   :  { %471 = vmatprep.subr.mxu0 %v2976_v30  ;;  %4106 = vst [vmem:[#allocation25_spill] sm:$0xff] %v3307_v2 }
  0xdd   :  { %472 = vmatpush1.msra.mxu0 %v2982_v31 }
  0xde   :  { %473 = vmatprep.subr.mxu0 %v2988_v32 }
  0xdf   :  { %474 = vmatpush1.msra.mxu0 %v3002_v34 }
  0xe0   :  { %475 = vmatprep.subr.mxu0 %v3014_v36 }
  0xe1   :  { %476 = vmatpush1.msra.mxu0 %v3026_v38 }
  0xe2   :  { %2398 = vmatprep.subr.mxu0 %v3038_v40 }
 0x19a   :  { %v343_v42 = vpop.f32.mrf.mxu0 }
 0x19b   :  { %v3045_v43 = vadd.f32 %v2328_v41, %v343_v42  ;;  %v3290_v41 = vld [vmem:[%s4022_s17 + $0x28] sm:$0xff] }
 0x19c   :  { %v2617_v46 = vpop.f32.mrf.mxu0  ;;  %4103 = vst [vmem:[#allocation22_spill] sm:$0xff] %v3290_v41  ;;  %v3295_v42 = vld [vmem:[%s4022_s17 + $0x128] sm:$0xff] }
 0x19d   :  { %2331 = vmatmul.mubr.msk.f32.vlgmr.msra.gmra.mxu1 %vm187_vm2, %v3045_v43  ;;  %2332 = vmatmul.mubr.msk.f32.vlgmr.msra.gmra.mxu0 %vm187_vm2, %v3045_v43  ;;  %4104 = vst [vmem:[#allocation23_spill] sm:$0xff] %v3295_v42  ;;  %v3302_v46 = vld [vmem:[%s4022_s17 + $0xa0] sm:$0xff] }
 0x19e   :  { %2364 = vmatpush3.msra.mxu1 %v3050_v44  ;;  %2399 = vmatpush3.msra.mxu0 %v3055_v45  ;;  %4105 = vst [vmem:[#allocation24_spill] sm:$0xff] %v3302_v46 }
 0x19f   :  { %2365 = vmatprep.subr.mxu1 %v3060_v47  ;;  %2400 = vmatprep.subr.mxu0 %v3065_v48 }
 0x1a0   :  { %2366 = vmatpush3.msra.mxu1 %v3074_v49  ;;  %2401 = vmatpush3.msra.mxu0 %v3079_v50 }
 0x1a1   :  { %2367 = vmatprep.subr.mxu1 %v3086_v51  ;;  %2402 = vmatprep.subr.mxu0 %v3091_v52 }
 0x1a2   :  { %2368 = vmatpush3.msra.mxu1 %v3098_v53  ;;  %2403 = vmatpush3.msra.mxu0 %v3103_v54 }
 0x1a3   :  { %2369 = vmatprep.subr.mxu1 %v3110_v55  ;;  %2404 = vmatprep.subr.mxu0 %v3115_v56 }
 0x1a4   :  { %2370 = vmatpush3.msra.mxu1 %v3122_v57  ;;  %2405 = vmatpush3.msra.mxu0 %v3127_v58 }
 0x1a5   :  { %2371 = vmatprep.subr.mxu1 %v3134_v59  ;;  %2406 = vmatprep.subr.mxu0 %v3139_v60 }
 0x1a6   :  { %2372 = vmatpush3.msra.mxu1 %v3146_v61  ;;  %2407 = vmatpush3.msra.mxu0 %v3151_v62 }
 0x1a7   :  { %2373 = vmatprep.subr.mxu1 %v3158_v63  ;;  %2408 = vmatprep.subr.mxu0 %v3163_v0 }
 0x1a8   :  { %2374 = vmatpush3.msra.mxu1 %v3170_v1  ;;  %2409 = vmatpush3.msra.mxu0 %v3175_v3 }
 0x1a9   :  { %2375 = vmatprep.subr.mxu1 %v3182_v4  ;;  %2410 = vmatprep.subr.mxu0 %v3187_v5 }
 0x1aa   :  { %2376 = vmatpush3.msra.mxu1 %v3194_v6  ;;  %2411 = vmatpush3.msra.mxu0 %v3199_v7 }
 0x1ab   :  { %2377 = vmatprep.subr.mxu1 %v3206_v8  ;;  %2412 = vmatprep.subr.mxu0 %v3211_v9  ;;  %v355_v8 = vsel %vm354_vm3, %v3045_v43, -inf }
 0x1ac   :  { %2378 = vmatpush3.msra.mxu1 %v3218_v10  ;;  %2413 = vmatpush3.msra.mxu0 %v3223_v11 }
 0x1ad   :  { %2379 = vmatprep.subr.mxu1 %v3230_v12  ;;  %2414 = vmatprep.subr.mxu0 %v3235_v14  ;;  %v4065_v12 = vmov 32  }
 0x1ae   :  { %2380 = vmatpush3.msra.mxu1 %v3242_v19  ;;  %2415 = vmatpush3.msra.mxu0 %v3247_v20 }
 0x1af   :  { %2381 = vmatprep.subr.mxu1 %v3254_v21  ;;  %2416 = vmatprep.subr.mxu0 %v3259_v23 }
 0x1b0   :  { %2382 = vmatpush3.msra.mxu1 %v3266_v24  ;;  %2417 = vmatpush3.msra.mxu0 %v3271_v26  ;;  %v3314_v24 = vld [vmem:[%s4022_s17 + $0x20] sm:$0xff] }
 0x1b1   :  { %2383 = vmatprep.subr.mxu1 %v3278_v27  ;;  %2418 = vmatprep.subr.mxu0 %v3283_v28  ;;  %4107 = vst [vmem:[#allocation26_spill] sm:$0xff] %v3314_v24  ;;  %v3319_v26 = vld [vmem:[%s4022_s17 + $0x120] sm:$0xff]  ;;  %v3326_v27 = vld [vmem:[%s4022_s17 + $0x98] sm:$0xff] }
 0x1b2   :  { %4108 = vst [vmem:[#allocation27_spill] sm:$0xff] %v3319_v26  ;;  %2384 = vmatpush3.msra.mxu1 %v3290_v41  ;;  %2419 = vmatpush3.msra.mxu0 %v3295_v42  ;;  %4109 = vst [vmem:[#allocation28_spill] sm:$0xff] %v3326_v27  ;;  %v3331_v28 = vld [vmem:[%s4022_s17 + $0x198] sm:$0xff] }
 0x1b3   :  { %4110 = vst [vmem:[#allocation29_spill] sm:$0xff] %v3331_v28  ;;  %2385 = vmatprep.subr.mxu1 %v3302_v46  ;;  %2420 = vmatprep.subr.mxu0 %v3307_v2  ;;  %v3338_v41 = vld [vmem:[%s4022_s17 + $0x18] sm:$0xff]  ;;  %v3354_v2 = vld [vmem:[%s4022_s17 + $0x90] sm:$0xff] }
 0x1b4   :  { %4111 = vst [vmem:[#allocation30_spill] sm:$0xff] %v3338_v41  ;;  %v3343_v42 = vld [vmem:[%s4022_s17 + $0x118] sm:$0xff]  ;;  %2386 = vmatpush3.msra.mxu1 %v3314_v24  ;;  %2421 = vmatpush3.msra.mxu0 %v3319_v26  ;;  %4113 = vst [vmem:[#allocation32_spill] sm:$0xff] %v3354_v2  ;;  %v3359_v46 = vld [vmem:[%s4022_s17 + $0x190] sm:$0xff] }
 0x1b5   :  { %4112 = vst [vmem:[#allocation31_spill] sm:$0xff] %v3343_v42  ;;  %2387 = vmatprep.subr.mxu1 %v3326_v27  ;;  %2422 = vmatprep.subr.mxu0 %v3331_v28  ;;  %4114 = vst [vmem:[#allocation33_spill] sm:$0xff] %v3359_v46  ;;  %v3412_v28 = vld [vmem:[%s4022_s17] sm:$0xff]  ;;  %v3427_v24 = vld [vmem:[%s4126_s11 + $0x8] sm:$0xff] }
 0x1b6   :  { %2388 = vmatpush3.msra.mxu1 %v3338_v41  ;;  %2423 = vmatpush3.msra.mxu0 %v3343_v42  ;;  %v3366_v41 = vld [vmem:[%s4022_s17 + $0x10] sm:$0xff]  ;;  %4123 = vst [vmem:[#allocation42_spill] sm:$0xff] %v3412_v28 }
 0x1b7   :  { %2389 = vmatprep.subr.mxu1 %v3354_v2  ;;  %2424 = vmatprep.subr.mxu0 %v3359_v46  ;;  %4115 = vst [vmem:[#allocation34_spill] sm:$0xff] %v3366_v41  ;;  %v3371_v42 = vld [vmem:[%s4022_s17 + $0x110] sm:$0xff]  ;;  %v3378_v2 = vld [vmem:[%s4022_s17 + $0x88] sm:$0xff] }
 0x1b8   :  { %4116 = vst [vmem:[#allocation35_spill] sm:$0xff] %v3371_v42  ;;  %2390 = vmatpush3.msra.mxu1 %v3366_v41  ;;  %2425 = vmatpush3.msra.mxu0 %v3371_v42  ;;  %4117 = vst [vmem:[#allocation36_spill] sm:$0xff] %v3378_v2  ;;  %v3383_v46 = vld [vmem:[%s4022_s17 + $0x188] sm:$0xff] }
 0x1b9   :  { %4118 = vst [vmem:[#allocation37_spill] sm:$0xff] %v3383_v46  ;;  %2391 = vmatprep.subr.mxu1 %v3378_v2  ;;  %2426 = vmatprep.subr.mxu0 %v3383_v46  ;;  %v3390_v41 = vld [vmem:[%s4022_s17 + $0x8] sm:$0xff]  ;;  %v3402_v2 = vld [vmem:[%s4022_s17 + $0x80] sm:$0xff] }
 0x1ba   :  { %4119 = vst [vmem:[#allocation38_spill] sm:$0xff] %v3390_v41  ;;  %v3395_v42 = vld [vmem:[%s4022_s17 + $0x108] sm:$0xff]  ;;  %2392 = vmatpush3.msra.mxu1 %v3390_v41  ;;  %4121 = vst [vmem:[#allocation40_spill] sm:$0xff] %v3402_v2  ;;  %v3407_v46 = vld [vmem:[%s4022_s17 + $0x180] sm:$0xff]  ;;  %v4125_v41 = vmov 0.0   ;;  %2670 = vset.pattern.permute.xlu0 %v4065_v12 }
 0x1bb   :  { %4120 = vst [vmem:[#allocation39_spill] sm:$0xff] %v3395_v42  ;;  %2427 = vmatpush3.msra.mxu0 %v3395_v42  ;;  %4122 = vst [vmem:[#allocation41_spill] sm:$0xff] %v3407_v46  ;;  %2393 = vmatprep.subr.mxu1 %v3402_v2  ;;  %v3419_v42 = vld [vmem:[%s4022_s17 + $0x100] sm:$0xff] }
 0x1bc   :  { %2428 = vmatprep.subr.mxu0 %v3407_v46  ;;  %4124 = vst [vmem:[#allocation43_spill] sm:$0xff] %v3419_v42  ;;  %2394 = vmatpush3.msra.mxu1 %v3412_v28  ;;  %v3432_v46 = vld [vmem:[%s4126_s11 + $0x18] sm:$0xff]  ;;  %v3437_v28 = vld [vmem:[%s4126_s11] sm:$0xff] }
 0x1bd   :  { %2429 = vmatpush3.msra.mxu0 %v3419_v42  ;;  %2618 = vmatprep.subr.mxu1 %v4125_v41  ;;  %v3442_v42 = vld [vmem:[%s4126_s11 + $0x10] sm:$0xff] }
 0x1be   :  { %2669 = vset.pattern.permute.xlu1 %v4065_v12 }
 0x25d   :  { %v440_v27 = vpop.f32.mrf.mxu1  ;;  %v511_v26 = vpop.f32.mrf.mxu0 }
 0x25e   :  { %v516_v19 = vmul.f32 %v440_v27, %v3437_v28  ;;  %v518_v14 = vmul.f32 %v511_v26, %v3442_v42 }
 0x25f   :  { %v442_v2 = vpop.f32.mrf.mxu1  ;;  %v513_v23 = vpop.f32.mrf.mxu0 }
 0x260   :  { %v517_v21 = vmul.f32 %v442_v2, %v3427_v24  ;;  %v519_v20 = vmul.f32 %v513_v23, %v3432_v46  ;;  %v2330_v2 = vmul.f32 -1.442695, %v3045_v43 }
 0x262   :  { %648 = vmatprep.mubr.f32.mxu1 %v517_v21  ;;  %718 = vmatprep.mubr.f32.mxu0 %v519_v20  ;;  %2680 = vpow2.f32 %v2330_v2 }
 0x263   :  { %649 = vmatmul.mubr.f32.vlgmr.msra.gmra.mxu1 %v516_v19  ;;  %719 = vmatmul.mubr.f32.vlgmr.msra.gmra.mxu0 %v518_v14 }
 0x264   :  { %2622 = vmatprep.mubr.msk.f32.mxu1 %vm2754_vm1, %v4125_v41  ;;  %918 = vmatprep.mubr.f32.mxu0 %v4125_v41 }
 0x26f   :  { %v2681_v9 = vpop.eup %2680 }
 0x270   :  { %v351_v12 = vadd.f32 1.0, %v2681_v9 }
 0x272   :  { %2682 = vrcp.f32 %v351_v12 }
 0x27f   :  { %v2683_v2 = vpop.eup %2682 }
 0x280   :  { %v742_v7 = vsub.f32 1.0, %v2683_v2 }
 0x323   :  { %v2395_v23 = vpop.f32.mrf.mxu1  ;;  %v2430_v27 = vpop.f32.mrf.mxu0 }
 0x325   :  { %v2396_v26 = vpop.f32.mrf.mxu1  ;;  %v2431_v21 = vpop.f32.mrf.mxu0 }
 0x326   :  { %v2397_v20 = vadd.f32 %v2396_v26, %v2395_v23  ;;  %v2432_v19 = vadd.f32 %v2431_v21, %v2430_v27 }
 0x328   :  { %v721_v14 = vadd.f32 %v2432_v19, %v2397_v20  ;;  %v347_v19 = vld [vmem:[%s4127_s27] sm:$0xff] }
 0x32a   :  { %v724_v11 = vmul.f32 0.17677669, %v721_v14 }
 0x32c   :  { %v725_v10 = vsel %vm102_vm0, %v724_v11, -inf }
 0x32d   :  { %726 = vmax.xlane.f32.xlu0 %v725_v10 }
 0x331   :  { %356 = vmax.xlane.f32.xlu0 %v355_v8 }
 0x347   :  { %745 = vperm.xlu0 %2670, %v742_v7  }
 0x3b6   :  { %v727_v6 = vpop.xlane.xlu0 %726 }
 0x3b7   :  { %v728_v5 = vsub.f32 %v724_v11, %v727_v6  ;;  %v3463_v6 = vld [vmem:[%s4023_s18 + $0x8] sm:$0xff] }
 0x3b8   :  { %2619 = vmatpush3.msra.mxu1 %v3463_v6 }
 0x3b9   :  { %v729_v23 = vmul.f32 1.442695, %v728_v5  ;;  %2620 = vmatprep.subr.mxu1 %v4125_v41 }
 0x3ba   :  { %v357_v27 = vpop.xlane.xlu0 %356 }
 0x3bb   :  { %2684 = vpow2.f32 %v729_v23  ;;  %v358_v21 = vsub.f32 %v3045_v43, %v357_v27  ;;  %v3470_v43 = vld [vmem:[%s4023_s18] sm:$0xff]  ;;  %s2759_s18 = smov 64  }
 0x3bc   :  { %2621 = vmatpush3.msra.mxu1 %v3470_v43 }
 0x3bd   :  { %v359_v20 = vmul.f32 1.442695, %v358_v21 }
 0x3bf   :  { %2686 = vpow2.f32 %v359_v20  ;;  %v4070_v20 = vmov 33  }
 0x3c2   :  { %v746_v14 = vpop.permute.xlu0 %745 }
 0x3c3   :  { %v748_v23 = vmul.f32 %v746_v14, %v347_v19  ;;  %v3494_v14 = vld [vmem:[%s4021_s16 + $0x38] sm:$0xff] }
 0x3c4   :  { %4129 = vst [vmem:[#allocation44_spill] sm:$0xff] %v3494_v14  ;;  %953 = vmatprep.subr.mxu1 %v3494_v14 }
 0x3c8   :  { %v2685_v26 = vpop.eup %2684 }
 0x3c9   :  { %v731_v10 = vsel %vm102_vm0, %v2685_v26, 0.0 }
 0x3ca   :  { %732 = vadd.xlane.f32.xlu1 %v731_v10  ;;  %v4073_v10 = vmov 34  }
 0x3cb   :  { %2671 = vset.pattern.permute.xlu0 %v4073_v10 }
 0x3cc   :  { %v2687_v9 = vpop.eup %2686 }
 0x3db   :  { %738 = vperm.xlu1 %2669, %v2683_v2  }
 0x3df   :  { %362 = vrot.lane.b32.xlu1 %v2687_v9, %s2756_s23 }
 0x3e0   :  { %2673 = vset.pattern.permute.xlu1 %v4070_v20 }
 0x453   :  { %v733_v5 = vpop.xlane.xlu1 %732 }
 0x454   :  { %2688 = vrcp.f32 %v733_v5 }
 0x457   :  { %v739_v7 = vpop.permute.xlu1 %738 }
 0x45b   :  { %v363_v8 = vpop.permute.xlu1 %362 }
 0x45c   :  { %v366_v11 = vsel %vm365_vm4, %v363_v8, 0.0 }
 0x45d   :  { %367 = vadd.xlane.f32.xlu1 %v366_v11 }
 0x461   :  { %v2689_v12 = vpop.eup %2688 }
 0x462   :  { %v735_v2 = vmul.f32 %v2689_v12, %v2685_v26  ;;  %v4071_v26 = vmov 35  }
 0x464   :  { %v741_v27 = vmul.f32 %v739_v7, %v735_v2  ;;  %v4128_v7 = vmov 32   ;;  %v3499_v2 = vld [vmem:[%s4021_s16 + $0x20] sm:$0xff] }
 0x466   :  { %v749_v21 = vadd.f32 %v748_v23, %v741_v27  ;;  %v3506_v23 = vld [vmem:[%s4021_s16 + $0x30] sm:$0xff]  ;;  %v3511_v27 = vld [vmem:[%s4021_s16 + $0x8] sm:$0xff] }
 0x467   :  { %4130 = vst [vmem:[#allocation45_spill] sm:$0xff] %v3506_v23  ;;  %4131 = vst [vmem:[#allocation46_spill] sm:$0xff] %v3511_v27 }
 0x468   :  { %2623 = vmatmul.mubr.msk.f32.vlgmr.msra.gmra.mxu1 %vm102_vm0, %v749_v21  ;;  %v3516_v21 = vld [vmem:[%s4021_s16 + $0x18] sm:$0xff] }
 0x469   :  { %989 = vmatprep.mubr.f32.mxu1 %v4125_v41  ;;  %4132 = vst [vmem:[#allocation47_spill] sm:$0xff] %v3516_v21  ;;  %954 = vmatpush1.msra.mxu1 %v3506_v23 }
 0x46a   :  { %955 = vmatprep.subr.mxu1 %v3516_v21 }
 0x4e6   :  { %v368_v5 = vpop.xlane.xlu1 %367 }
 0x4e7   :  { %2690 = vrcp.f32 %v368_v5  ;;  %v3525_v5 = vld [vmem:[%s4021_s16] sm:$0xff] }
 0x4e8   :  { %4133 = vst [vmem:[#allocation48_spill] sm:$0xff] %v3525_v5 }
 0x4f4   :  { %v2691_v8 = vpop.eup %2690 }
 0x4f5   :  { %v370_v11 = vmul.f32 %v2691_v8, %v2687_v9  ;;  %v3489_v9 = vld [vmem:[%s4021_s16 + $0x28] sm:$0xff]  ;;  %v3530_v8 = vld [vmem:[%s4021_s16 + $0x10] sm:$0xff]  ;;  %s2762_s16 = smov 96  }
 0x4f6   :  { %882 = vmatprep.subr.mxu0 %v3489_v9  ;;  %4134 = vst [vmem:[#allocation49_spill] sm:$0xff] %v3530_v8  ;;  %956 = vmatpush1.msra.mxu1 %v3530_v8 }
 0x4f7   :  { %827 = vperm.xlu1 %2673, %v370_v11   ;;  %832 = vperm.xlu0 %2671, %v370_v11  }
 0x4f8   :  { %883 = vmatpush1.msra.mxu0 %v3499_v2 }
 0x4f9   :  { %884 = vmatprep.subr.mxu0 %v3511_v27 }
 0x4fa   :  { %885 = vmatpush1.msra.mxu0 %v3525_v5 }
 0x4fb   :  { %1294 = vrot.lane.b32.xlu1 %v2964_v25, %s2759_s18  ;;  %2672 = vset.pattern.permute.xlu0 %v4071_v26 }
 0x4fc   :  { %842 = vperm.xlu0 %2672, %v370_v11   ;;  %2675 = vset.pattern.permute.xlu1 %v4128_v7  ;;  %v1031_v11 = vld [vmem:[%s4020_s15 + $0xf8] sm:$0xff] }
 0x4fd   :  { %2436 = vmatprep.subr.mxu0 %v1031_v11  ;;  %v1015_v11 = vld [vmem:[%s4020_s15 + $0x78] sm:$0xff] }
 0x500   :  { %2674 = vset.pattern.permute.xlu0 %v4128_v7  ;;  %v1063_v7 = vld [vmem:[%s4020_s15 + $0x1f8] sm:$0xff] }
 0x501   :  { %2471 = vmatprep.subr.mxu1 %v1063_v7  ;;  %v1028_v7 = vld [vmem:[%s4020_s15 + $0xe0] sm:$0xff] }
 0x528   :  { %v821_v12 = vpop.f32.mrf.mxu1 }
 0x52a   :  { %v2624_v19 = vpop.f32.mrf.mxu1 }
 0x572   :  { %v833_v19 = vpop.permute.xlu0 %832  ;;  %v828_v8 = vpop.permute.xlu1 %827 }
 0x573   :  { %v835_v20 = vmul.f32 %v833_v19, %v821_v12  ;;  %v830_v23 = vmul.f32 %v828_v8, %v821_v12  ;;  %v1045_v8 = vld [vmem:[%s4020_s15 + $0x168] sm:$0xff]  ;;  %v1060_v19 = vld [vmem:[%s4020_s15 + $0x1e0] sm:$0xff] }
 0x575   :  { %837 = vrot.lane.b32.xlu0 %v835_v20, %s2761_s28  ;;  %v1047_v20 = vld [vmem:[%s4020_s15 + $0x178] sm:$0xff] }
 0x577   :  { %v843_v26 = vpop.permute.xlu0 %842 }
 0x578   :  { %v845_v10 = vmul.f32 %v843_v26, %v821_v12  ;;  %v1030_v26 = vld [vmem:[%s4020_s15 + $0xf0] sm:$0xff] }
 0x579   :  { %v1014_v12 = vld [vmem:[%s4020_s15 + $0x70] sm:$0xff] }
 0x57a   :  { %847 = vrot.lane.b32.xlu0 %v845_v10, %s2762_s16  ;;  %v1062_v10 = vld [vmem:[%s4020_s15 + $0x1f0] sm:$0xff] }
 0x5e7   :  { %v838_v21 = vpop.permute.xlu0 %837 }
 0x5e8   :  { %v840_v5 = vadd.f32 %v838_v21, %v830_v23  ;;  %v1029_v23 = vld [vmem:[%s4020_s15 + $0xe8] sm:$0xff] }
 0x5e9   :  { %v1061_v21 = vld [vmem:[%s4020_s15 + $0x1e8] sm:$0xff] }
 0x5ec   :  { %v848_v14 = vpop.permute.xlu0 %847 }
 0x5ed   :  { %v3542_v27 = vadd.f32 %v848_v14, %v840_v5  ;;  %v1046_v14 = vld [vmem:[%s4020_s15 + $0x170] sm:$0xff]  ;;  %v1013_v5 = vld [vmem:[%s4020_s15 + $0x68] sm:$0xff] }
 0x5ef   :  { %2334 = vmatmul.mubr.msk.f32.vlgmr.msra.gmra.mxu0 %vm102_vm0, %v3542_v27  ;;  %2335 = vmatmul.mubr.msk.f32.vlgmr.msra.gmra.mxu1 %vm102_vm0, %v3542_v27 }
 0x5f0   :  { %2437 = vmatpush3.msra.mxu0 %v1015_v11  ;;  %2472 = vmatpush3.msra.mxu1 %v1047_v20  ;;  %v1012_v11 = vld [vmem:[%s4020_s15 + $0x60] sm:$0xff] }
 0x5f1   :  { %2438 = vmatprep.subr.mxu0 %v1030_v26  ;;  %2473 = vmatprep.subr.mxu1 %v1062_v10  ;;  %v1044_v20 = vld [vmem:[%s4020_s15 + $0x160] sm:$0xff]  ;;  %v1027_v26 = vld [vmem:[%s4020_s15 + $0xd8] sm:$0xff] }
 0x5f2   :  { %2439 = vmatpush3.msra.mxu0 %v1014_v12  ;;  %2474 = vmatpush3.msra.mxu1 %v1046_v14  ;;  %v1059_v10 = vld [vmem:[%s4020_s15 + $0x1d8] sm:$0xff] }
 0x5f3   :  { %2440 = vmatprep.subr.mxu0 %v1029_v23  ;;  %2475 = vmatprep.subr.mxu1 %v1061_v21  ;;  %v1011_v12 = vld [vmem:[%s4020_s15 + $0x58] sm:$0xff]  ;;  %v1026_v23 = vld [vmem:[%s4020_s15 + $0xd0] sm:$0xff] }
 0x5f4   :  { %2441 = vmatpush3.msra.mxu0 %v1013_v5  ;;  %2476 = vmatpush3.msra.mxu1 %v1045_v8  ;;  %v1043_v14 = vld [vmem:[%s4020_s15 + $0x158] sm:$0xff]  ;;  %v1058_v21 = vld [vmem:[%s4020_s15 + $0x1d0] sm:$0xff] }
 0x5f5   :  { %2442 = vmatprep.subr.mxu0 %v1028_v7  ;;  %2477 = vmatprep.subr.mxu1 %v1060_v19  ;;  %v1010_v5 = vld [vmem:[%s4020_s15 + $0x50] sm:$0xff]  ;;  %v1025_v7 = vld [vmem:[%s4020_s15 + $0xc8] sm:$0xff] }
 0x5f6   :  { %2443 = vmatpush3.msra.mxu0 %v1012_v11  ;;  %2478 = vmatpush3.msra.mxu1 %v1044_v20  ;;  %v1042_v8 = vld [vmem:[%s4020_s15 + $0x150] sm:$0xff]  ;;  %v1057_v19 = vld [vmem:[%s4020_s15 + $0x1c8] sm:$0xff] }
 0x5f7   :  { %2444 = vmatprep.subr.mxu0 %v1027_v26  ;;  %2479 = vmatprep.subr.mxu1 %v1059_v10  ;;  %v1009_v11 = vld [vmem:[%s4020_s15 + $0x48] sm:$0xff]  ;;  %v1024_v26 = vld [vmem:[%s4020_s15 + $0xc0] sm:$0xff] }
 0x5f8   :  { %2445 = vmatpush3.msra.mxu0 %v1011_v12  ;;  %2480 = vmatpush3.msra.mxu1 %v1043_v14  ;;  %v1041_v20 = vld [vmem:[%s4020_s15 + $0x148] sm:$0xff]  ;;  %v1056_v10 = vld [vmem:[%s4020_s15 + $0x1c0] sm:$0xff] }
 0x5f9   :  { %2446 = vmatprep.subr.mxu0 %v1026_v23  ;;  %2481 = vmatprep.subr.mxu1 %v1058_v21  ;;  %v1008_v12 = vld [vmem:[%s4020_s15 + $0x40] sm:$0xff]  ;;  %v1023_v23 = vld [vmem:[%s4020_s15 + $0xb8] sm:$0xff] }
 0x5fa   :  { %2447 = vmatpush3.msra.mxu0 %v1010_v5  ;;  %2482 = vmatpush3.msra.mxu1 %v1042_v8  ;;  %v1040_v14 = vld [vmem:[%s4020_s15 + $0x140] sm:$0xff]  ;;  %v1055_v21 = vld [vmem:[%s4020_s15 + $0x1b8] sm:$0xff] }
 0x5fb   :  { %2448 = vmatprep.subr.mxu0 %v1025_v7  ;;  %2483 = vmatprep.subr.mxu1 %v1057_v19  ;;  %v1007_v5 = vld [vmem:[%s4020_s15 + $0x38] sm:$0xff]  ;;  %v1022_v7 = vld [vmem:[%s4020_s15 + $0xb0] sm:$0xff] }
 0x5fc   :  { %2449 = vmatpush3.msra.mxu0 %v1009_v11  ;;  %2484 = vmatpush3.msra.mxu1 %v1041_v20  ;;  %v1039_v8 = vld [vmem:[%s4020_s15 + $0x138] sm:$0xff]  ;;  %v1054_v19 = vld [vmem:[%s4020_s15 + $0x1b0] sm:$0xff] }
 0x5fd   :  { %2450 = vmatprep.subr.mxu0 %v1024_v26  ;;  %2485 = vmatprep.subr.mxu1 %v1056_v10  ;;  %v1006_v11 = vld [vmem:[%s4020_s15 + $0x30] sm:$0xff]  ;;  %v1021_v26 = vld [vmem:[%s4020_s15 + $0xa8] sm:$0xff] }
 0x5fe   :  { %2451 = vmatpush3.msra.mxu0 %v1008_v12  ;;  %2486 = vmatpush3.msra.mxu1 %v1040_v14  ;;  %v1038_v20 = vld [vmem:[%s4020_s15 + $0x130] sm:$0xff]  ;;  %v1053_v10 = vld [vmem:[%s4020_s15 + $0x1a8] sm:$0xff] }
 0x5ff   :  { %2452 = vmatprep.subr.mxu0 %v1023_v23  ;;  %2487 = vmatprep.subr.mxu1 %v1055_v21  ;;  %v1005_v12 = vld [vmem:[%s4020_s15 + $0x28] sm:$0xff]  ;;  %v1020_v23 = vld [vmem:[%s4020_s15 + $0xa0] sm:$0xff] }
 0x600   :  { %2453 = vmatpush3.msra.mxu0 %v1007_v5  ;;  %2488 = vmatpush3.msra.mxu1 %v1039_v8  ;;  %v1037_v14 = vld [vmem:[%s4020_s15 + $0x128] sm:$0xff]  ;;  %v1052_v21 = vld [vmem:[%s4020_s15 + $0x1a0] sm:$0xff] }
 0x601   :  { %2454 = vmatprep.subr.mxu0 %v1022_v7  ;;  %2489 = vmatprep.subr.mxu1 %v1054_v19  ;;  %v1004_v5 = vld [vmem:[%s4020_s15 + $0x20] sm:$0xff]  ;;  %v1019_v7 = vld [vmem:[%s4020_s15 + $0x98] sm:$0xff] }
 0x602   :  { %2455 = vmatpush3.msra.mxu0 %v1006_v11  ;;  %2490 = vmatpush3.msra.mxu1 %v1038_v20  ;;  %v1036_v8 = vld [vmem:[%s4020_s15 + $0x120] sm:$0xff]  ;;  %v1051_v19 = vld [vmem:[%s4020_s15 + $0x198] sm:$0xff] }
 0x603   :  { %2456 = vmatprep.subr.mxu0 %v1021_v26  ;;  %2491 = vmatprep.subr.mxu1 %v1053_v10  ;;  %v1003_v11 = vld [vmem:[%s4020_s15 + $0x18] sm:$0xff]  ;;  %v1018_v26 = vld [vmem:[%s4020_s15 + $0x90] sm:$0xff] }
 0x604   :  { %2457 = vmatpush3.msra.mxu0 %v1005_v12  ;;  %2492 = vmatpush3.msra.mxu1 %v1037_v14  ;;  %v1035_v20 = vld [vmem:[%s4020_s15 + $0x118] sm:$0xff]  ;;  %v1050_v10 = vld [vmem:[%s4020_s15 + $0x190] sm:$0xff] }
 0x605   :  { %2458 = vmatprep.subr.mxu0 %v1020_v23  ;;  %2493 = vmatprep.subr.mxu1 %v1052_v21  ;;  %v1002_v12 = vld [vmem:[%s4020_s15 + $0x10] sm:$0xff]  ;;  %v1017_v23 = vld [vmem:[%s4020_s15 + $0x88] sm:$0xff] }
 0x606   :  { %2459 = vmatpush3.msra.mxu0 %v1004_v5  ;;  %2494 = vmatpush3.msra.mxu1 %v1036_v8  ;;  %v1034_v14 = vld [vmem:[%s4020_s15 + $0x110] sm:$0xff]  ;;  %v1049_v21 = vld [vmem:[%s4020_s15 + $0x188] sm:$0xff] }
 0x607   :  { %2460 = vmatprep.subr.mxu0 %v1019_v7  ;;  %2495 = vmatprep.subr.mxu1 %v1051_v19  ;;  %v1001_v5 = vld [vmem:[%s4020_s15 + $0x8] sm:$0xff]  ;;  %v1016_v7 = vld [vmem:[%s4020_s15 + $0x80] sm:$0xff] }
 0x608   :  { %2461 = vmatpush3.msra.mxu0 %v1003_v11  ;;  %2496 = vmatpush3.msra.mxu1 %v1035_v20  ;;  %v1033_v8 = vld [vmem:[%s4020_s15 + $0x108] sm:$0xff]  ;;  %v1048_v19 = vld [vmem:[%s4020_s15 + $0x180] sm:$0xff] }
 0x609   :  { %2462 = vmatprep.subr.mxu0 %v1018_v26  ;;  %2497 = vmatprep.subr.mxu1 %v1050_v10  ;;  %v1000_v11 = vld [vmem:[%s4020_s15] sm:$0xff] }
 0x60a   :  { %2463 = vmatpush3.msra.mxu0 %v1002_v12  ;;  %2498 = vmatpush3.msra.mxu1 %v1034_v14  ;;  %v1032_v20 = vld [vmem:[%s4020_s15 + $0x100] sm:$0xff] }
 0x60b   :  { %2464 = vmatprep.subr.mxu0 %v1017_v23  ;;  %2499 = vmatprep.subr.mxu1 %v1049_v21 }
 0x60c   :  { %2465 = vmatpush3.msra.mxu0 %v1001_v5  ;;  %2500 = vmatpush3.msra.mxu1 %v1033_v8 }
 0x60d   :  { %2466 = vmatprep.subr.mxu0 %v1016_v7  ;;  %2501 = vmatprep.subr.mxu1 %v1048_v19  ;;  %v1207_v7 = vld [vmem:[%s4014_s9 + $0x18] sm:$0xff]  ;;  %v1206_v19 = vld [vmem:[%s4014_s9 + $0x10] sm:$0xff] }
 0x60e   :  { %2467 = vmatpush3.msra.mxu0 %v1000_v11  ;;  %2502 = vmatpush3.msra.mxu1 %v1032_v20  ;;  %v1205_v11 = vld [vmem:[%s4014_s9 + $0x8] sm:$0xff]  ;;  %v1204_v20 = vld [vmem:[%s4014_s9] sm:$0xff]  ;;  %s2763_s9 = smov 32  }
 0x60f   :  { %2625 = vmatprep.subr.mxu0 %v4125_v41  ;;  %2636 = vmatprep.subr.mxu1 %v4125_v41 }
 0x6af   :  { %v920_v26 = vpop.f32.mrf.mxu0  ;;  %v991_v10 = vpop.f32.mrf.mxu1 }
 0x6b0   :  { %v996_v5 = vmul.f32 %v920_v26, %v3437_v28  ;;  %v998_v8 = vmul.f32 %v991_v10, %v3442_v42 }
 0x6b1   :  { %v922_v12 = vpop.f32.mrf.mxu0  ;;  %v993_v14 = vpop.f32.mrf.mxu1 }
 0x6b2   :  { %v997_v23 = vmul.f32 %v922_v12, %v3427_v24  ;;  %v999_v21 = vmul.f32 %v993_v14, %v3432_v46 }
 0x6b4   :  { %1128 = vmatprep.mubr.f32.mxu0 %v997_v23  ;;  %1198 = vmatprep.mubr.f32.mxu1 %v999_v21 }
 0x6b5   :  { %1129 = vmatmul.mubr.f32.vlgmr.msra.gmra.mxu0 %v996_v5  ;;  %1199 = vmatmul.mubr.f32.vlgmr.msra.gmra.mxu1 %v998_v8 }
 0x6b6   :  { %2633 = vmatprep.mubr.msk.f32.mxu0 %vm2754_vm1, %v4125_v41  ;;  %2644 = vmatprep.mubr.msk.f32.mxu1 %vm2754_vm1, %v4125_v41 }
 0x6b7   :  { %2626 = vmatpush3.msra.mxu0 %v1207_v7 }
 0x6b8   :  { %2627 = vmatprep.subr.mxu0 %v4125_v41 }
 0x6b9   :  { %2628 = vmatpush3.msra.mxu0 %v1206_v19  ;;  %v1295_v19 = vpop.permute.xlu1 %1294 }
 0x6ba   :  { %2629 = vmatprep.subr.mxu0 %v4125_v41 }
 0x6bb   :  { %2630 = vmatpush3.msra.mxu0 %v1205_v11 }
 0x6bc   :  { %2631 = vmatprep.subr.mxu0 %v4125_v41 }
 0x6bd   :  { %2632 = vmatpush3.msra.mxu0 %v1204_v20  ;;  %v1317_v20 = vld [vmem:[%s4017_s12 + $0x10] sm:$0xff] }
 0x6be   :  { %1450 = vmatprep.subr.mxu0 %v2926_v13 }
 0x775   :  { %v2468_v26 = vpop.f32.mrf.mxu0  ;;  %v2503_v10 = vpop.f32.mrf.mxu1 }
 0x777   :  { %v2469_v12 = vpop.f32.mrf.mxu0  ;;  %v2504_v14 = vpop.f32.mrf.mxu1 }
 0x778   :  { %v2470_v23 = vadd.f32 %v2469_v12, %v2468_v26  ;;  %v2505_v21 = vadd.f32 %v2504_v14, %v2503_v10  ;;  %v1316_v26 = vld [vmem:[%s4017_s12 + $0x8] sm:$0xff]  ;;  %v1315_v10 = vld [vmem:[%s4017_s12] sm:$0xff]  ;;  %v3796_v14 = vld [vmem:[%s4019_s14 + $0x78] sm:$0xff] }
 0x77a   :  { %v1201_v5 = vadd.f32 %v2505_v21, %v2470_v23 }
 0x77c   :  { %2634 = vmatmul.mubr.msk.f32.vlgmr.msra.gmra.mxu0 %vm187_vm2, %v1201_v5 }
 0x77d   :  { %1451 = vmatpush1.msra.mxu0 %v2934_v15  ;;  %1490 = vmatprep.mubr.f32.mxu0 %v4125_v41 }
 0x77e   :  { %1452 = vmatprep.subr.mxu0 %v2940_v16 }
 0x77f   :  { %1453 = vmatpush1.msra.mxu0 %v2946_v17 }
 0x780   :  { %1454 = vmatprep.subr.mxu0 %v2952_v18 }
 0x781   :  { %1455 = vmatpush1.msra.mxu0 %v2997_v33 }
 0x782   :  { %1456 = vmatprep.subr.mxu0 %v3009_v35 }
 0x783   :  { %1457 = vmatpush1.msra.mxu0 %v3021_v37 }
 0x784   :  { %2516 = vmatprep.subr.mxu0 %v3033_v39  ;;  %v2710_v39 = vld [vmem:[%s4085_s30] sm:$0xff] }
 0x83c   :  { %v1277_v13 = vpop.f32.mrf.mxu0 }
 0x83d   :  { %1282 = vrot.lane.b32.xlu0 %v1277_v13, %s2763_s9 }
 0x83e   :  { %v2635_v15 = vpop.f32.mrf.mxu0 }
 0x8af   :  { %v1283_v8 = vpop.permute.xlu0 %1282 }
 0x8b0   :  { %v1285_v16 = vadd.f32 %v1283_v8, %v2962_v22 }
 0x8b2   :  { %v1286_v17 = vadd.f32 %v1285_v16, %v2964_v25  ;;  %v1318_v25 = vld [vmem:[%s4017_s12 + $0x18] sm:$0xff] }
 0x8b3   :  { %2637 = vmatpush3.msra.mxu1 %v1318_v25  ;;  %v4168_v25 = vld [vmem:[#allocation38_spill] sm:$0xff] }
 0x8b4   :  { %v2337_v7 = vmul.f32 -1.442695, %v1286_v17  ;;  %2638 = vmatprep.subr.mxu1 %v4125_v41 }
 0x8b5   :  { %2639 = vmatpush3.msra.mxu1 %v1317_v20  ;;  %v4169_v20 = vld [vmem:[#allocation39_spill] sm:$0xff] }
 0x8b6   :  { %2692 = vpow2.f32 %v2337_v7  ;;  %2640 = vmatprep.subr.mxu1 %v4125_v41 }
 0x8b7   :  { %2641 = vmatpush3.msra.mxu1 %v1316_v26  ;;  %v4170_v26 = vld [vmem:[#allocation40_spill] sm:$0xff] }
 0x8b8   :  { %2642 = vmatprep.subr.mxu1 %v4125_v41 }
 0x8b9   :  { %2643 = vmatpush3.msra.mxu1 %v1315_v10 }
 0x8ba   :  { %1521 = vmatprep.subr.mxu1 %v3796_v14 }
 0x8c3   :  { %v2693_v18 = vpop.eup %2692 }
 0x8c4   :  { %v1290_v33 = vadd.f32 1.0, %v2693_v18  ;;  %v4160_v18 = vld [vmem:[#allocation30_spill] sm:$0xff] }
 0x8c6   :  { %2694 = vrcp.f32 %v1290_v33  ;;  %v4161_v33 = vld [vmem:[#allocation31_spill] sm:$0xff] }
 0x8d3   :  { %v2695_v35 = vpop.eup %2694 }
 0x8d4   :  { %v1297_v37 = vmul.f32 %v2695_v35, %v1295_v19  ;;  %v1304_v21 = vsub.f32 1.0, %v2695_v35  ;;  %v4163_v19 = vld [vmem:[#allocation33_spill] sm:$0xff] }
 0x8d6   :  { %1299 = vrot.lane.b32.xlu0 %v1297_v37, %s2759_s18  ;;  %v4164_v37 = vld [vmem:[#allocation34_spill] sm:$0xff] }
 0x8da   :  { %1310 = vrot.lane.b32.xlu0 %v2710_v39, %s2759_s18  ;;  %v4165_v39 = vld [vmem:[#allocation35_spill] sm:$0xff] }
 0x948   :  { %v1300_v11 = vpop.permute.xlu0 %1299 }
 0x949   :  { %v1302_v22 = vadd.f32 %v1300_v11, %v1285_v16  ;;  %v4166_v11 = vld [vmem:[#allocation36_spill] sm:$0xff] }
 0x94b   :  { %2696 = vtanh.f32 %v1302_v22  ;;  %v4167_v22 = vld [vmem:[#allocation37_spill] sm:$0xff] }
 0x94c   :  { %v1311_v23 = vpop.permute.xlu0 %1310 }
 0x94d   :  { %v1313_v13 = vmul.f32 %v2695_v35, %v1311_v23  ;;  %v4162_v35 = vld [vmem:[#allocation32_spill] sm:$0xff]  ;;  %v4172_v23 = vld [vmem:[#allocation42_spill] sm:$0xff] }
 0x958   :  { %v2697_v12 = vpop.eup %2696 }
 0x959   :  { %1306 = vrot.lane.b32.xlu1 %v2697_v12, %s2762_s16  ;;  %v4171_v12 = vld [vmem:[#allocation41_spill] sm:$0xff] }
 0x9cb   :  { %v1307_v5 = vpop.permute.xlu1 %1306 }
 0x9cc   :  { %v1309_v15 = vmul.f32 %v1307_v5, %v1304_v21  ;;  %v4173_v5 = vld [vmem:[#allocation43_spill] sm:$0xff] }
 0x9ce   :  { %v1314_v8 = vadd.f32 %v1313_v13, %v1309_v15 }
 0x9d0   :  { %1327 = vrot.lane.b32.xlu1 %v1314_v8, %s2759_s18 }
 0xa42   :  { %v1328_v16 = vpop.permute.xlu1 %1327 }
 0xa43   :  { %2299 = vst.msk [vmem:[#allocation2 + $0x20] sm:$0xff] %vm187_vm2, %v1328_v16  ;;  %2645 = vmatmul.mubr.msk.f32.vlgmr.msra.gmra.mxu1 %vm187_vm2, %v1328_v16 }
 0xa44   :  { %1522 = vmatpush1.msra.mxu1 %v2971_v29  ;;  %1561 = vmatprep.mubr.f32.mxu1 %v4125_v41  ;;  %v2338_v29 = vld [vmem:[%s4018_s13] ss:$0 sm:$0xff] }
 0xa45   :  { %1523 = vmatprep.subr.mxu1 %v2976_v30 }
 0xa46   :  { %1524 = vmatpush1.msra.mxu1 %v2982_v31 }
 0xa47   :  { %1525 = vmatprep.subr.mxu1 %v2988_v32 }
 0xa48   :  { %1526 = vmatpush1.msra.mxu1 %v3002_v34  ;;  %v4135_v34 = vld [vmem:[#allocation5_spill] sm:$0xff] }
 0xa49   :  { %1527 = vmatprep.subr.mxu1 %v3014_v36  ;;  %v4136_v36 = vld [vmem:[#allocation6_spill] sm:$0xff] }
 0xa4a   :  { %1528 = vmatpush1.msra.mxu1 %v3026_v38  ;;  %v4137_v38 = vld [vmem:[#allocation7_spill] sm:$0xff] }
 0xa4b   :  { %2551 = vmatprep.subr.mxu1 %v3038_v40  ;;  %v4138_v40 = vld [vmem:[#allocation8_spill] sm:$0xff] }
 0xb03   :  { %v1397_v17 = vpop.f32.mrf.mxu1 }
 0xb04   :  { %v3815_v7 = vadd.f32 %v2338_v29, %v1397_v17 }
 0xb05   :  { %v2646_v30 = vpop.f32.mrf.mxu1 }
 0xb06   :  { %v2340_v31 = vmul.f32 -1.442695, %v3815_v7  ;;  %2341 = vmatmul.mubr.msk.f32.vlgmr.msra.gmra.mxu0 %vm187_vm2, %v3815_v7  ;;  %2342 = vmatmul.mubr.msk.f32.vlgmr.msra.gmra.mxu1 %vm187_vm2, %v3815_v7  ;;  %v1408_v32 = vsel %vm354_vm3, %v3815_v7, -inf }
 0xb07   :  { %1409 = vmax.xlane.f32.xlu1 %v1408_v32  ;;  %2517 = vmatpush3.msra.mxu0 %v3050_v44 }
 0xb08   :  { %2698 = vpow2.f32 %v2340_v31  ;;  %2552 = vmatpush3.msra.mxu1 %v3055_v45  ;;  %2518 = vmatprep.subr.mxu0 %v3060_v47  ;;  %v4139_v45 = vld [vmem:[#allocation9_spill] sm:$0xff]  ;;  %v4140_v47 = vld [vmem:[#allocation10_spill] sm:$0xff] }
 0xb09   :  { %2553 = vmatprep.subr.mxu1 %v3065_v48  ;;  %2519 = vmatpush3.msra.mxu0 %v3074_v49  ;;  %v4141_v49 = vld [vmem:[#allocation11_spill] sm:$0xff] }
 0xb0a   :  { %2554 = vmatpush3.msra.mxu1 %v3079_v50  ;;  %2520 = vmatprep.subr.mxu0 %v3086_v51  ;;  %v4142_v50 = vld [vmem:[#allocation12_spill] sm:$0xff]  ;;  %v4143_v51 = vld [vmem:[#allocation13_spill] sm:$0xff] }
 0xb0b   :  { %2555 = vmatprep.subr.mxu1 %v3091_v52  ;;  %2521 = vmatpush3.msra.mxu0 %v3098_v53  ;;  %v4144_v52 = vld [vmem:[#allocation14_spill] sm:$0xff]  ;;  %v4145_v53 = vld [vmem:[#allocation15_spill] sm:$0xff] }
 0xb0c   :  { %2556 = vmatpush3.msra.mxu1 %v3103_v54  ;;  %2522 = vmatprep.subr.mxu0 %v3110_v55  ;;  %v4146_v54 = vld [vmem:[#allocation16_spill] sm:$0xff]  ;;  %v4147_v55 = vld [vmem:[#allocation17_spill] sm:$0xff] }
 0xb0d   :  { %2557 = vmatprep.subr.mxu1 %v3115_v56  ;;  %2523 = vmatpush3.msra.mxu0 %v3122_v57  ;;  %v4148_v56 = vld [vmem:[#allocation18_spill] sm:$0xff]  ;;  %v4149_v57 = vld [vmem:[#allocation19_spill] sm:$0xff] }
 0xb0e   :  { %2558 = vmatpush3.msra.mxu1 %v3127_v58  ;;  %2524 = vmatprep.subr.mxu0 %v3134_v59  ;;  %v4150_v58 = vld [vmem:[#allocation20_spill] sm:$0xff]  ;;  %v4151_v59 = vld [vmem:[#allocation21_spill] sm:$0xff] }
 0xb0f   :  { %2559 = vmatprep.subr.mxu1 %v3139_v60  ;;  %2525 = vmatpush3.msra.mxu0 %v3146_v61  ;;  %v4152_v60 = vld [vmem:[#allocation22_spill] sm:$0xff]  ;;  %v4153_v61 = vld [vmem:[#allocation23_spill] sm:$0xff] }
 0xb10   :  { %2560 = vmatpush3.msra.mxu1 %v3151_v62  ;;  %2526 = vmatprep.subr.mxu0 %v3158_v63  ;;  %v4154_v62 = vld [vmem:[#allocation24_spill] sm:$0xff]  ;;  %v4155_v63 = vld [vmem:[#allocation25_spill] sm:$0xff] }
 0xb11   :  { %2561 = vmatprep.subr.mxu1 %v3163_v0  ;;  %2527 = vmatpush3.msra.mxu0 %v3170_v1  ;;  %v4156_v0 = vld [vmem:[#allocation26_spill] sm:$0xff]  ;;  %v4157_v1 = vld [vmem:[#allocation27_spill] sm:$0xff] }
 0xb12   :  { %2562 = vmatpush3.msra.mxu1 %v3175_v3  ;;  %2528 = vmatprep.subr.mxu0 %v3182_v4  ;;  %v4158_v3 = vld [vmem:[#allocation28_spill] sm:$0xff]  ;;  %v4159_v4 = vld [vmem:[#allocation29_spill] sm:$0xff] }
 0xb13   :  { %2563 = vmatprep.subr.mxu1 %v4135_v34  ;;  %2529 = vmatpush3.msra.mxu0 %v4136_v36 }
 0xb14   :  { %2564 = vmatpush3.msra.mxu1 %v4137_v38  ;;  %2530 = vmatprep.subr.mxu0 %v4138_v40 }
 0xb15   :  { %v2699_v44 = vpop.eup %2698  ;;  %2565 = vmatprep.subr.mxu1 %v4139_v45  ;;  %2531 = vmatpush3.msra.mxu0 %v4140_v47 }
 0xb16   :  { %v1405_v48 = vadd.f32 1.0, %v2699_v44  ;;  %2566 = vmatpush3.msra.mxu1 %v4141_v49  ;;  %2532 = vmatprep.subr.mxu0 %v4142_v50 }
 0xb17   :  { %2567 = vmatprep.subr.mxu1 %v4143_v51  ;;  %2533 = vmatpush3.msra.mxu0 %v4144_v52 }
 0xb18   :  { %2700 = vrcp.f32 %v1405_v48  ;;  %2568 = vmatpush3.msra.mxu1 %v4145_v53  ;;  %2534 = vmatprep.subr.mxu0 %v4146_v54 }
 0xb19   :  { %2569 = vmatprep.subr.mxu1 %v4147_v55  ;;  %2535 = vmatpush3.msra.mxu0 %v4148_v56 }
 0xb1a   :  { %2570 = vmatpush3.msra.mxu1 %v4149_v57  ;;  %2536 = vmatprep.subr.mxu0 %v4150_v58 }
 0xb1b   :  { %2571 = vmatprep.subr.mxu1 %v4151_v59  ;;  %2537 = vmatpush3.msra.mxu0 %v4152_v60  ;;  %v4177_v60 = vmov 34  }
 0xb1c   :  { %2572 = vmatpush3.msra.mxu1 %v4153_v61  ;;  %2538 = vmatprep.subr.mxu0 %v4154_v62  ;;  %v4178_v61 = vmov 35   ;;  %v4179_v62 = vmov 33  }
 0xb1d   :  { %2573 = vmatprep.subr.mxu1 %v4155_v63  ;;  %2539 = vmatpush3.msra.mxu0 %v4156_v0 }
 0xb1e   :  { %2574 = vmatpush3.msra.mxu1 %v4157_v1  ;;  %2540 = vmatprep.subr.mxu0 %v4158_v3  ;;  %v1401_v1 = vld [vmem:[%s4009_s4] sm:$0xff]  ;;  %s2764_s4 = smov 92  }
 0xb1f   :  { %2575 = vmatprep.subr.mxu1 %v4159_v4  ;;  %2541 = vmatpush3.msra.mxu0 %v4160_v18 }
 0xb20   :  { %2576 = vmatpush3.msra.mxu1 %v4161_v33  ;;  %2542 = vmatprep.subr.mxu0 %v4162_v35 }
 0xb21   :  { %2577 = vmatprep.subr.mxu1 %v4163_v19  ;;  %2543 = vmatpush3.msra.mxu0 %v4164_v37  ;;  %v4180_v19 = vld [vmem:[#allocation45_spill] sm:$0xff]  ;;  %v4181_v37 = vld [vmem:[#allocation47_spill] sm:$0xff] }
 0xb22   :  { %2578 = vmatpush3.msra.mxu1 %v4165_v39  ;;  %2544 = vmatprep.subr.mxu0 %v4166_v11  ;;  %v4182_v39 = vld [vmem:[#allocation49_spill] sm:$0xff] }
 0xb23   :  { %2579 = vmatprep.subr.mxu1 %v4167_v22  ;;  %2545 = vmatpush3.msra.mxu0 %v4168_v25 }
 0xb24   :  { %2580 = vmatpush3.msra.mxu1 %v4169_v20  ;;  %2546 = vmatprep.subr.mxu0 %v4170_v26 }
 0xb25   :  { %v3883_v10 = vpop.eup %2700  ;;  %2581 = vmatprep.subr.mxu1 %v4171_v12  ;;  %2547 = vmatpush3.msra.mxu0 %v4172_v23 }
 0xb26   :  { %v1730_v21 = vsub.f32 1.0, %v3883_v10  ;;  %2582 = vmatpush3.msra.mxu1 %v4173_v5  ;;  %2647 = vmatprep.subr.mxu0 %v4125_v41 }
 0xb27   :  { %1868 = vmatprep.subr.mxu1 %v3489_v9 }
 0xb28   :  { %1733 = vperm.xlu1 %2675, %v1730_v21  }
 0xb90   :  { %v1410_v13 = vpop.xlane.xlu1 %1409 }
 0xb91   :  { %v1411_v15 = vsub.f32 %v3815_v7, %v1410_v13 }
 0xb93   :  { %v1412_v8 = vmul.f32 1.442695, %v1411_v15 }
 0xb95   :  { %2702 = vpow2.f32 %v1412_v8 }
 0xba2   :  { %v2703_v16 = vpop.eup %2702 }
 0xba3   :  { %1415 = vrot.lane.b32.xlu1 %v2703_v16, %s2756_s23 }
 0xbc6   :  { %v1492_v29 = vpop.f32.mrf.mxu0  ;;  %v1563_v17 = vpop.f32.mrf.mxu1 }
 0xbc7   :  { %v1568_v36 = vmul.f32 %v1492_v29, %v3437_v28  ;;  %v1570_v9 = vmul.f32 %v1563_v17, %v3442_v42  ;;  %v4175_v28 = vld [vmem:[#allocation44_spill] sm:$0xff]  ;;  %v2716_v29 = vld [vmem:[%s4019_s14 + $0x58] sm:$0xff] }
 0xbc8   :  { %v1494_v30 = vpop.f32.mrf.mxu0  ;;  %v1565_v31 = vpop.f32.mrf.mxu1  ;;  %v4176_v42 = vld [vmem:[#allocation48_spill] sm:$0xff] }
 0xbc9   :  { %v1569_v32 = vmul.f32 %v1494_v30, %v3427_v24  ;;  %v1571_v34 = vmul.f32 %v1565_v31, %v3432_v46  ;;  %v4174_v24 = vld [vmem:[#allocation46_spill] sm:$0xff]  ;;  %v3910_v46 = vld [vmem:[%s4019_s14 + $0x68] sm:$0xff]  ;;  %v2717_v17 = vld [vmem:[%s4019_s14 + $0x40] sm:$0xff] }
 0xbca   :  { %v2718_v30 = vld [vmem:[%s4019_s14 + $0x50] sm:$0xff]  ;;  %v2719_v31 = vld [vmem:[%s4019_s14 + $0x28] sm:$0xff] }
 0xbcb   :  { %1636 = vmatprep.mubr.f32.mxu0 %v1569_v32  ;;  %1706 = vmatprep.mubr.f32.mxu1 %v1571_v34  ;;  %v2720_v32 = vld [vmem:[%s4019_s14 + $0x38] sm:$0xff]  ;;  %v2721_v34 = vld [vmem:[%s4019_s14 + $0x20] sm:$0xff] }
 0xbcc   :  { %1637 = vmatmul.mubr.f32.vlgmr.msra.gmra.mxu0 %v1568_v36  ;;  %1707 = vmatmul.mubr.f32.vlgmr.msra.gmra.mxu1 %v1570_v9  ;;  %v2722_v36 = vld [vmem:[%s4019_s14 + $0x30] sm:$0xff]  ;;  %v2723_v9 = vld [vmem:[%s4019_s14 + $0x8] sm:$0xff] }
 0xbcd   :  { %2648 = vmatpush3.msra.mxu0 %v3463_v6  ;;  %2651 = vmatprep.mubr.msk.f32.mxu0 %vm2754_vm1, %v4125_v41  ;;  %v1734_v6 = vpop.permute.xlu1 %1733 }
 0xbce   :  { %2649 = vmatprep.subr.mxu0 %v4125_v41  ;;  %1869 = vmatpush1.msra.mxu1 %v3499_v2  ;;  %v1736_v18 = vmul.f32 %v1734_v6, %v1401_v1  ;;  %v2726_v6 = vld [vmem:[%s4019_s14 + $0x10] sm:$0xff]  ;;  %v2729_v1 = vld [vmem:[%s4126_s11 + $0x8] sm:$0xff] }
 0xbcf   :  { %2650 = vmatpush3.msra.mxu0 %v3470_v43  ;;  %1870 = vmatprep.subr.mxu1 %v4174_v24  ;;  %v2724_v24 = vld [vmem:[%s4019_s14 + $0x18] sm:$0xff] }
 0xbd0   :  { %1939 = vmatprep.subr.mxu0 %v4175_v28  ;;  %1871 = vmatpush1.msra.mxu1 %v4176_v42  ;;  %v2725_v28 = vld [vmem:[%s4019_s14] sm:$0xff] }
 0xbd1   :  { %1904 = vmatprep.mubr.f32.mxu1 %v4125_v41  ;;  %2010 = vmatprep.subr.mxu1 %v3910_v46 }
 0xc15   :  { %v1416_v38 = vpop.permute.xlu1 %1415 }
 0xc16   :  { %v1418_v2 = vsel %vm365_vm4, %v1416_v38, 0.0 }
 0xc17   :  { %1419 = vadd.xlane.f32.xlu1 %v1418_v2 }
 0xc8c   :  { %v2548_v43 = vpop.f32.mrf.mxu0  ;;  %v2583_v40 = vpop.f32.mrf.mxu1 }
 0xc8e   :  { %v2549_v44 = vpop.f32.mrf.mxu0  ;;  %v2584_v45 = vpop.f32.mrf.mxu1 }
 0xc8f   :  { %v2550_v47 = vadd.f32 %v2549_v44, %v2548_v43  ;;  %v2585_v48 = vadd.f32 %v2584_v45, %v2583_v40 }
 0xc91   :  { %v1709_v49 = vadd.f32 %v2585_v48, %v2550_v47 }
 0xc93   :  { %v1712_v50 = vmul.f32 0.17677669, %v1709_v49 }
 0xc95   :  { %v1713_v51 = vsel %vm102_vm0, %v1712_v50, -inf }
 0xc96   :  { %1714 = vmax.xlane.f32.xlu0 %v1713_v51 }
 0xca0   :  { %v1420_v57 = vpop.xlane.xlu1 %1419 }
 0xd1f   :  { %v1715_v52 = vpop.xlane.xlu0 %1714 }
 0xd20   :  { %v1716_v53 = vsub.f32 %v1712_v50, %v1715_v52 }
 0xd22   :  { %v1717_v54 = vmul.f32 1.442695, %v1716_v53 }
 0xd24   :  { %2704 = vpow2.f32 %v1717_v54 }
 0xd25   :  { %2706 = vrcp.f32 %v1420_v57  ;;  %v2727_v57 = vld [vmem:[%s4126_s11] sm:$0xff] }
 0xd31   :  { %v2705_v55 = vpop.eup %2704 }
 0xd32   :  { %v1719_v56 = vsel %vm102_vm0, %v2705_v55, 0.0  ;;  %v2707_v58 = vpop.eup %2706 }
 0xd33   :  { %1720 = vadd.xlane.f32.xlu0 %v1719_v56  ;;  %v1422_v59 = vmul.f32 %v2707_v58, %v2703_v16 }
 0xd49   :  { %1726 = vperm.xlu0 %2674, %v3883_v10  }
 0xd4d   :  { %2676 = vset.pattern.permute.xlu0 %v4177_v60 }
 0xd4e   :  { %1818 = vperm.xlu0 %2676, %v1422_v59  }
 0xd52   :  { %2677 = vset.pattern.permute.xlu0 %v4178_v61 }
 0xd53   :  { %1828 = vperm.xlu0 %2677, %v1422_v59  }
 0xd57   :  { %2678 = vset.pattern.permute.xlu0 %v4179_v62 }
 0xd58   :  { %1813 = vperm.xlu0 %2678, %v1422_v59  }
 0xd5c   :  { %2679 = vset.pattern.permute.xlu0 %v4178_v61  ;;  %v2728_v61 = vld [vmem:[%s4126_s11 + $0x10] sm:$0xff] }
 0xdbc   :  { %v1721_v63 = vpop.xlane.xlu0 %1720 }
 0xdbd   :  { %2708 = vrcp.f32 %v1721_v63 }
 0xdc4   :  { %v1727_v4 = vpop.permute.xlu0 %1726 }
 0xdc9   :  { %v1819_v11 = vpop.permute.xlu0 %1818 }
 0xdca   :  { %v2709_v0 = vpop.eup %2708 }
 0xdcb   :  { %v1723_v3 = vmul.f32 %v2709_v0, %v2705_v55 }
 0xdcd   :  { %v1729_v33 = vmul.f32 %v1727_v4, %v1723_v3 }
 0xdce   :  { %v1829_v22 = vpop.permute.xlu0 %1828 }
 0xdcf   :  { %v1737_v35 = vadd.f32 %v1736_v18, %v1729_v33 }
 0xdd1   :  { %2652 = vmatmul.mubr.msk.f32.vlgmr.msra.gmra.mxu0 %vm102_vm0, %v1737_v35  ;;  %v2730_v35 = vld [vmem:[%s4126_s11 + $0x18] sm:$0xff] }
 0xdd2   :  { %1940 = vmatpush1.msra.mxu0 %v4180_v19  ;;  %1975 = vmatprep.mubr.f32.mxu0 %v4125_v41 }
 0xdd3   :  { %1941 = vmatprep.subr.mxu0 %v4181_v37  ;;  %v1814_v23 = vpop.permute.xlu0 %1813 }
 0xdd4   :  { %1942 = vmatpush1.msra.mxu0 %v4182_v39 }
 0xdd5   :  { %2081 = vmatprep.subr.mxu0 %v3796_v14 }
 0xe91   :  { %v1807_v25 = vpop.f32.mrf.mxu0 }
 0xe92   :  { %v1821_v20 = vmul.f32 %v1819_v11, %v1807_v25  ;;  %v1831_v26 = vmul.f32 %v1829_v22, %v1807_v25  ;;  %v1816_v21 = vmul.f32 %v1814_v23, %v1807_v25 }
 0xe93   :  { %v2653_v12 = vpop.f32.mrf.mxu0 }
 0xe94   :  { %1823 = vrot.lane.b32.xlu1 %v1821_v20, %s2761_s28  ;;  %1833 = vrot.lane.b32.xlu0 %v1831_v26, %s2762_s16  ;;  %s2766_s28 = smov 48  }
 0xe98   :  { %2300 = vrot.lane.b32.xlu1 %v3542_v27, %s2763_s9  ;;  %1982 = vrot.lane.b32.xlu0 %v3883_v10, %s2764_s4  ;;  %v2713_v27 = vld [vmem:[%s4019_s14 + $0x60] sm:$0xff]  ;;  %v2715_v10 = vld [vmem:[%s4019_s14 + $0x48] sm:$0xff]  ;;  %s2316_s9 = sshll.u32 %s2767_s20, 4  ;;  %s2317_s9 = int_to_ptr.vmem [resolvable:$true] %s2316_s9 }
 0xe99   :  { %s2731_s1 = scalar_lea.vmem %s2317_s9, 640  ;;  %p2736_p1 = scmp.lt.s32.totalorder %s2317_s9, %s2317_s9 }
 0xe9a   :  { %p2732_p0 = scmp.ne.s32.totalorder %s2317_s9, %s2731_s1  ;;  %p2737_p2 = scmp.lt.s32.totalorder %s2731_s1, %s2731_s1 }
 0xe9c   :  { %2128 = vrot.lane.b32.xlu0 %v3815_v7, %s2765_s5  ;;  %v2714_v7 = vld [vmem:[%s4019_s14 + $0x70] sm:$0xff]  ;;  %p2738_p3 = por %p2737_p2, %p2736_p1 }
 0xe9e   :  { %p2739_p4 = pnand %p2738_p3, %p2732_p0 }
 0xf06   :  { %v1824_v5 = vpop.permute.xlu1 %1823  ;;  %v1834_v15 = vpop.permute.xlu0 %1833 }
 0xf07   :  { %v1826_v13 = vadd.f32 %v1824_v5, %v1816_v21 }
 0xf09   :  { %v1836_v8 = vadd.f32 %v1834_v15, %v1826_v13 }
 0xf0a   :  { %v2301_v16 = vpop.permute.xlu1 %2300  ;;  %v1983_v42 = vpop.permute.xlu0 %1982 }
 0xf0b   :  { %2304 = vst.msk [vmem:[#allocation2 + $0x20] sm:$0xff] %vm2303_vm5, %v2301_v16  ;;  %2305 = vrot.lane.b32.xlu0 %v1836_v8, %s2766_s28  ;;  %2344 = vmatmul.mubr.msk.f32.vlgmr.msra.gmra.mxu1 %vm102_vm0, %v1836_v8 }
 0xf0c   :  { %2345 = vmatmul.mubr.msk.f32.vlgmr.msra.gmra.mxu0 %vm102_vm0, %v1836_v8  ;;  %2011 = vmatpush1.msra.mxu1 %v2713_v27 }
 0xf0d   :  { %2082 = vmatpush1.msra.mxu0 %v2714_v7  ;;  %2012 = vmatprep.subr.mxu1 %v2715_v10 }
 0xf0e   :  { %2083 = vmatprep.subr.mxu0 %v2716_v29  ;;  %2013 = vmatpush1.msra.mxu1 %v2717_v17  ;;  %v2129_v38 = vpop.permute.xlu0 %2128 }
 0xf0f   :  { %2084 = vmatpush1.msra.mxu0 %v2718_v30  ;;  %2014 = vmatprep.subr.mxu1 %v2719_v31 }
 0xf10   :  { %2085 = vmatprep.subr.mxu0 %v2720_v32  ;;  %2015 = vmatpush1.msra.mxu1 %v2721_v34 }
 0xf11   :  { %2086 = vmatpush1.msra.mxu0 %v2722_v36  ;;  %2016 = vmatprep.subr.mxu1 %v2723_v9 }
 0xf12   :  { %2087 = vmatprep.subr.mxu0 %v2724_v24  ;;  %2017 = vmatpush1.msra.mxu1 %v2725_v28 }
 0xf13   :  { %2050 = vmatprep.mubr.f32.mxu1 %v4125_v41  ;;  %2088 = vmatpush1.msra.mxu0 %v2726_v6 }
 0xf14   :  { %2121 = vmatprep.mubr.f32.mxu0 %v4125_v41  ;;  %2346 = vmatmul.mubr.msk.f32.vlgmr.msra.gmra.mxu1 %vm187_vm2, %v1983_v42 }
 0xf15   :  { %2347 = vmatmul.mubr.msk.f32.vlgmr.msra.gmra.mxu0 %vm187_vm2, %v1983_v42  ;;  %2156 = vmatprep.subr.mxu1 %v3910_v46 }
 0xf16   :  { %2227 = vmatprep.subr.mxu0 %v3796_v14  ;;  %2157 = vmatpush1.msra.mxu1 %v2713_v27 }
 0xf17   :  { %2228 = vmatpush1.msra.mxu0 %v2714_v7  ;;  %2158 = vmatprep.subr.mxu1 %v2715_v10 }
 0xf18   :  { %2229 = vmatprep.subr.mxu0 %v2716_v29  ;;  %2159 = vmatpush1.msra.mxu1 %v2717_v17 }
 0xf19   :  { %2230 = vmatpush1.msra.mxu0 %v2718_v30  ;;  %2160 = vmatprep.subr.mxu1 %v2719_v31 }
 0xf1a   :  { %2231 = vmatprep.subr.mxu0 %v2720_v32  ;;  %2161 = vmatpush1.msra.mxu1 %v2721_v34 }
 0xf1b   :  { %2232 = vmatpush1.msra.mxu0 %v2722_v36  ;;  %2162 = vmatprep.subr.mxu1 %v2723_v9 }
 0xf1c   :  { %2233 = vmatprep.subr.mxu0 %v2724_v24  ;;  %2163 = vmatpush1.msra.mxu1 %v2725_v28 }
 0xf1d   :  { %2196 = vmatprep.mubr.f32.mxu1 %v4125_v41  ;;  %2234 = vmatpush1.msra.mxu0 %v2726_v6 }
 0xf1e   :  { %2267 = vmatprep.mubr.f32.mxu0 %v4125_v41  ;;  %2348 = vmatmul.mubr.msk.f32.vlgmr.msra.gmra.mxu1 %vm187_vm2, %v2129_v38 }
 0xf1f   :  { %2349 = vmatmul.mubr.msk.f32.vlgmr.msra.gmra.mxu0 %vm187_vm2, %v2129_v38 }
 0xf7d   :  { %v2306_v14 = vpop.permute.xlu0 %2305 }
 0xf7e   :  { %2309 = vst.msk [vmem:[#allocation2 + $0x20] sm:$0xff] %vm2308_vm6, %v2306_v14 }
 0xfcb   :  { %v1906_v46 = vpop.f32.mrf.mxu1 }
 0xfcc   :  { %v1977_v2 = vpop.f32.mrf.mxu0 }
 0xfcd   :  { %v1908_v43 = vpop.f32.mrf.mxu1 }
 0xfce   :  { %v1979_v40 = vpop.f32.mrf.mxu0 }
 0xfd4   :  { %v2052_v44 = vpop.f32.mrf.mxu1 }
 0xfd5   :  { %v2123_v45 = vpop.f32.mrf.mxu0  ;;  %v2274_v48 = vmul.f32 %v2052_v44, %v1906_v46 }
 0xfd6   :  { %v2054_v47 = vpop.f32.mrf.mxu1  ;;  %v2276_v50 = vmul.f32 %v2123_v45, %v1977_v2 }
 0xfd7   :  { %v2125_v49 = vpop.f32.mrf.mxu0  ;;  %v2275_v51 = vmul.f32 %v2054_v47, %v1908_v43  ;;  %v2278_v41 = vsub.f32 1.0, %v2274_v48 }
 0xfd8   :  { %v2277_v52 = vmul.f32 %v2125_v49, %v1979_v40  ;;  %v2280_v53 = vsub.f32 1.0, %v2276_v50 }
 0xfd9   :  { %v2279_v54 = vsub.f32 1.0, %v2275_v51  ;;  %v2282_v58 = vmul.f32 %v2727_v57, %v2278_v41 }
 0xfda   :  { %v2281_v55 = vsub.f32 1.0, %v2277_v52  ;;  %v2284_v62 = vmul.f32 %v2728_v61, %v2280_v53 }
 0xfdb   :  { %v2283_v3 = vmul.f32 %v2729_v1, %v2279_v54 }
 0xfdc   :  { %v2285_v19 = vmul.f32 %v2730_v35, %v2281_v55 }
 0xfde   :  { %v2198_v56 = vpop.f32.mrf.mxu1 }
 0xfdf   :  { %v2286_v59 = vmul.f32 %v2198_v56, %v1906_v46  ;;  %v2269_v60 = vpop.f32.mrf.mxu0 }
 0xfe0   :  { %v2288_v63 = vmul.f32 %v2269_v60, %v1977_v2  ;;  %v2200_v0 = vpop.f32.mrf.mxu1 }
 0xfe1   :  { %v2290_v4 = vadd.f32 %v2286_v59, %v2282_v58  ;;  %v2287_v18 = vmul.f32 %v2200_v0, %v1908_v43  ;;  %v2271_v33 = vpop.f32.mrf.mxu0 }
 0xfe2   :  { %v2292_v37 = vadd.f32 %v2288_v63, %v2284_v62  ;;  %v2289_v39 = vmul.f32 %v2271_v33, %v1979_v40 }
 0xfe3   :  { %2294 = vst [vmem:[#allocation2] sm:$0xff] %v2290_v4  ;;  %v2291_v11 = vadd.f32 %v2287_v18, %v2283_v3 }
 0xfe4   :  { %2296 = vst [vmem:[#allocation2 + $0x10] sm:$0xff] %v2292_v37  ;;  %v2293_v22 = vadd.f32 %v2289_v39, %v2285_v19 }
 0xfe5   :  { %2295 = vst [vmem:[#allocation2 + $0x8] sm:$0xff] %v2291_v11 }
 0xfe6   :  { %2297 = vst [vmem:[#allocation2 + $0x18] sm:$0xff] %v2293_v22 }
 0xfe7   :  { %2742 = shalt.err (!%p2739_p4)
}
 0xfe8   :  { %2319 = dma.vmem_to_hbm [thread:$0]  %s2317_s9, 640, %s4024_s19, [#allocation3]  }
 0xfe9   :  { %2751 = dma.done.wait [#allocation3], 640  }
 0xfea   :  { %2752 = vsyncadd [#allocation3], 4294966656 }
 0xfeb   :  { %2323 = vsyncpa [#allocation3], 1 }

</bundles_post_ra>
